<compile_context>
chip_gen: v7x
topology: tpu7x:2x2x1
jax: 0.10.0
libtpu: 0.0.40
codegen_flags: <defaults>
</compile_context>

<pallas_src>
import functools

import jax
import jax.numpy as jnp
from jax.experimental import pallas as pl
from jax.experimental.pallas import tpu as pltpu

_VMEM_LIMIT = 32 * 1024 * 1024   # explicit scoped-VMEM budget, safe on v5e / v6e / v7x
_APPROX_RECIP = True             # EUP approx reciprocal in softmax (set False for exact)


def _round8(x):
    return -(-x // 8) * 8


# ---------------------------------------------------------------------------
# Single fused per-sample kernel.
#   z      = W_big @ x          W_big = [w_down ; w_pre ; w1 ; w2] (row-padded)
#   res    = z[down rows]                               (cout, t*v)
#   pre    = relu(z[pre rows])                          (kmid, t*v)
#   x1/x2  = mean_t(z[w1/w2 rows])  (as matmul w/ mean matrix)     (kmid, v)
#   A_all  = alpha0 * tanh(x1_u - x2_w) + beta0 * softmax_u(x1^T x2) + A_param
#   gx     = pre (kmid, t, v)  batched-@  A_all (kmid, v, v)
#   out    = relu(bn(w_post @ gx) + res)                (cout, t*v)
# ---------------------------------------------------------------------------
def _dggcn_kernel(ab_ref, x_ref, wbig_ref, s_ref, h_ref, mmean_ref, a_ref,
                  wpost_ref, sbn_ref, hbn_ref, out_ref, *,
                  cout, kmid, K, mid, t, v, off_pre, off_w1, off_w2):
    alpha0 = ab_ref[0]
    beta0 = ab_ref[1]
    x = x_ref[0]                                                   # (cin, t*v)

    # Stage 1: down + pre + conv1 + conv2 as one stacked channel-major matmul.
    z = jnp.dot(wbig_ref[...], x, preferred_element_type=jnp.float32)
    z = z * s_ref[...] + h_ref[...]                                # folded BN + conv bias
    res = z[0:cout, :]                                             # (cout, t*v)
    pre = jnp.maximum(z[off_pre:off_pre + kmid, :], 0.0)           # (kmid, t*v)

    # Stage 2: mean over t of the conv1/conv2 rows, expressed as a matmul
    # (avoids a lane-sparse in-kernel reduction; bias already folded in).
    x1 = jnp.dot(z[off_w1:off_w1 + kmid, :], mmean_ref[...],
                 preferred_element_type=jnp.float32)               # (kmid, v)
    x2 = jnp.dot(z[off_w2:off_w2 + kmid, :], mmean_ref[...],
                 preferred_element_type=jnp.float32)               # (kmid, v)

    # Stage 3a: ada branch -- m[k,u,w] = sum_c x1[k,c,u] x2[k,c,w]; softmax over u.
    x1k = x1.reshape(K, mid, v)
    x2k = x2.reshape(K, mid, v)
    m = jax.lax.dot_general(x1k, x2k,
                            dimension_numbers=(((1,), (1,)), ((0,), (0,))),
                            preferred_element_type=jnp.float32)    # (K, v, v)
    m = m - jnp.max(m, axis=1, keepdims=True)
    e = jnp.exp(m)
    soft = e * pl.reciprocal(jnp.sum(e, axis=1, keepdims=True), approx=_APPROX_RECIP)
    base = beta0 * soft + a_ref[...]                               # (K, v, v)
    base = jnp.broadcast_to(base[:, None, :, :],
                            (K, mid, v, v)).reshape(kmid, v, v)    # per-k -> per-(k,mid)

    # Stage 3b: ctr branch -- per-(k, mid-channel) tanh(x1_u - x2_w).
    ctr = jnp.tanh(x1[:, :, None] - x2[:, None, :])                # (kmid, v, v)
    a_all = alpha0 * ctr + base                                    # (kmid, v, v)

    # Stage 4: graph apply, single dot batched over all K*mid channels.
    pre3 = pre.reshape(kmid, t, v)
    gx = jax.lax.dot_general(pre3, a_all,
                             dimension_numbers=(((2,), (1,)), ((0,), (0,))),
                             preferred_element_type=jnp.float32)   # (kmid, t, v)
    gx = gx.reshape(kmid, t * v)

    # Stage 5: post conv + BN + residual + ReLU; lane-dense NCHW-flat store.
    y = jnp.dot(wpost_ref[...], gx, preferred_element_type=jnp.float32)
    y = y * sbn_ref[...] + hbn_ref[...] + res
    out_ref[0] = jnp.maximum(y, 0.0).astype(out_ref.dtype)


def _dggcn_pallas(ab, x_flat, w_big, s_big, h_big, mean_mat, a_param,
                  w_post, s_bn, h_bn, *, K, mid, t, v, off_pre, off_w1, off_w2):
    n, cin, tv = x_flat.shape
    cbig = w_big.shape[0]
    cout, kmid = w_post.shape
    kern = functools.partial(
        _dggcn_kernel, cout=cout, kmid=kmid, K=K, mid=mid, t=t, v=v,
        off_pre=off_pre, off_w1=off_w1, off_w2=off_w2)
    return pl.pallas_call(
        kern,
        out_shape=jax.ShapeDtypeStruct((n, cout, tv), jnp.float32),
        grid=(n,),
        in_specs=[
            pl.BlockSpec(memory_space=pltpu.MemorySpace.SMEM),       # [alpha0, beta0]
            pl.BlockSpec((1, cin, tv), lambda i: (i, 0, 0)),          # x (NCHW flat)
            pl.BlockSpec((cbig, cin), lambda i: (0, 0)),              # stacked W
            pl.BlockSpec((cbig, 1), lambda i: (0, 0)),                # stacked scale
            pl.BlockSpec((cbig, 1), lambda i: (0, 0)),                # stacked shift
            pl.BlockSpec((tv, v), lambda i: (0, 0)),                  # t-mean matrix
            pl.BlockSpec((K, v, v), lambda i: (0, 0, 0)),             # A param
            pl.BlockSpec((cout, kmid), lambda i: (0, 0)),             # w_post
            pl.BlockSpec((cout, 1), lambda i: (0, 0)),                # bn scale
            pl.BlockSpec((cout, 1), lambda i: (0, 0)),                # bn shift (+bias)
        ],
        out_specs=pl.BlockSpec((1, cout, tv), lambda i: (i, 0, 0)),
        compiler_params=pltpu.CompilerParams(
            dimension_semantics=("parallel",), vmem_limit_bytes=_VMEM_LIMIT),
    )(ab, x_flat, w_big, s_big, h_big, mean_mat, a_param, w_post, s_bn, h_bn)


# ---------------------------------------------------------------------------
# Full dggcn forward: tiny host-side weight prep + one fused pallas_call.
# All activation movement is free contiguous reshapes at the HBM boundary.
# ---------------------------------------------------------------------------
def dggcn_forward(x, params):
    n, c, t, v = x.shape
    K = params["A"].shape[0]
    kmid = params["w_pre"].shape[1]
    mid = kmid // K
    cout = params["w_down"].shape[1]
    tv = t * v

    # Stacked weight [down ; pre ; conv1 ; conv2] with each row-group padded to a
    # multiple of 8 (aligned sublane slices in-kernel).  Conv biases folded into
    # the shift vector; BN scale/shift folded per channel.
    off_pre = _round8(cout)
    off_w1 = off_pre + _round8(kmid)
    off_w2 = off_w1 + _round8(kmid)
    cbig = off_w2 + _round8(kmid)

    w_big = jnp.zeros((cbig, c), jnp.float32)
    s_big = jnp.ones((cbig,), jnp.float32)
    h_big = jnp.zeros((cbig,), jnp.float32)
    w_big = w_big.at[0:cout].set(params["w_down"].T)
    w_big = w_big.at[off_pre:off_pre + kmid].set(params["w_pre"].T)
    w_big = w_big.at[off_w1:off_w1 + kmid].set(params["w1"].T)
    w_big = w_big.at[off_w2:off_w2 + kmid].set(params["w2"].T)
    s_big = s_big.at[0:cout].set(params["s_down"])
    s_big = s_big.at[off_pre:off_pre + kmid].set(params["s_pre"])
    h_big = h_big.at[0:cout].set(params["t_down"] + params["b_down"] * params["s_down"])
    h_big = h_big.at[off_pre:off_pre + kmid].set(
        params["t_pre"] + params["b_pre"] * params["s_pre"])
    h_big = h_big.at[off_w1:off_w1 + kmid].set(params["b1"])
    h_big = h_big.at[off_w2:off_w2 + kmid].set(params["b2"])

    # Constant matrix implementing the mean over t: (t*v, v), block-identity / t.
    mean_mat = jnp.tile(jnp.eye(v, dtype=jnp.float32) / t, (t, 1))

    w_post = params["w_post"].T                                    # (cout, kmid)
    s_bn = params["s_bn"][:, None]
    h_bn = (params["t_bn"] + params["b_post"] * params["s_bn"])[:, None]

    ab = jnp.stack([params["alpha"][0], params["beta"][0]]).astype(jnp.float32)

    x_flat = x.reshape(n, c, tv)                                   # free reshape
    out_flat = _dggcn_pallas(
        ab, x_flat, w_big, s_big[:, None], h_big[:, None], mean_mat, params["A"],
        w_post, s_bn, h_bn, K=K, mid=mid, t=t, v=v,
        off_pre=off_pre, off_w1=off_w1, off_w2=off_w2)
    return out_flat.reshape(n, cout, t, v)                         # already NCHW


# ---------------------------------------------------------------------------
# Pure-JAX reference (for correctness checking of the Pallas path)
# ---------------------------------------------------------------------------
def dggcn_reference(x, params):
    n, c, t, v = x.shape
    K = params["A"].shape[0]
    mid = params["w_pre"].shape[1] // K

    def conv1x1(xin, w, b):
        return jnp.einsum("ncij,cd->ndij", xin, w,
                          precision=jax.lax.Precision.HIGHEST) + b[None, :, None, None]

    def bn(y, s, tt):
        return y * s[None, :, None, None] + tt[None, :, None, None]

    res = bn(conv1x1(x, params["w_down"], params["b_down"]),
             params["s_down"], params["t_down"])
    pre = jax.nn.relu(bn(conv1x1(x, params["w_pre"], params["b_pre"]),
                         params["s_pre"], params["t_pre"]))
    pre_x = pre.reshape(n, K, mid, t, v)

    tmp = jnp.mean(x, axis=2, keepdims=True)
    x1 = conv1x1(tmp, params["w1"], params["b1"]).reshape(n, K, mid, 1, v)
    x2 = conv1x1(tmp, params["w2"], params["b2"]).reshape(n, K, mid, 1, v)

    A = params["A"][None, :, None, None]                          # (1,K,1,1,v,v)
    diff = x1[..., :, None] - x2[..., None, :]                    # (n,K,mid,1,v,v)
    A = jnp.tanh(diff) * params["alpha"][0] + A
    ada = jnp.einsum("nkctv,nkctw->nktvw", x1, x2,
                     precision=jax.lax.Precision.HIGHEST)[:, :, None]
    ada = jax.nn.softmax(ada, axis=-2) * params["beta"][0]
    A = ada + A                                                   # (n,K,mid,1,v,v)
    A = A[:, :, :, 0]                                             # squeeze(3)

    xo = jnp.einsum("nkctv,nkcvw->nkctw", pre_x, A,
                    precision=jax.lax.Precision.HIGHEST)
    xo = xo.reshape(n, K * mid, t, v)
    post = conv1x1(xo, params["w_post"], params["b_post"])
    return jax.nn.relu(bn(post, params["s_bn"], params["t_bn"]) + res)


# ---------------------------------------------------------------------------
# Deterministic synthetic parameter construction
# ---------------------------------------------------------------------------
def make_params(key, in_channels, out_channels, K, v, ratio=0.25):
    mid = int(ratio * out_channels)
    ks = list(jax.random.split(key, 16))

    def w(k, shape, s=0.1):
        return (s * jax.random.normal(k, shape)).astype(jnp.float32)

    def bn_affine(k, ch, eps=1e-5):
        k1, k2, k3, k4 = jax.random.split(k, 4)
        gamma = jax.random.uniform(k1, (ch,), minval=0.5, maxval=1.5)
        beta = 0.1 * jax.random.normal(k2, (ch,))
        mean = 0.1 * jax.random.normal(k3, (ch,))
        var = jax.random.uniform(k4, (ch,), minval=0.5, maxval=1.5)
        scale = gamma / jnp.sqrt(var + eps)
        shift = beta - mean * scale
        return scale.astype(jnp.float32), shift.astype(jnp.float32)

    s_pre, t_pre = bn_affine(ks[0], mid * K)
    s_down, t_down = bn_affine(ks[1], out_channels)
    s_bn, t_bn = bn_affine(ks[2], out_channels)

    return dict(
        A=w(ks[3], (K, v, v), 0.3),
        w_pre=w(ks[4], (in_channels, mid * K)), b_pre=w(ks[5], (mid * K,)),
        s_pre=s_pre, t_pre=t_pre,
        w1=w(ks[6], (in_channels, mid * K)), b1=w(ks[7], (mid * K,)),
        w2=w(ks[8], (in_channels, mid * K)), b2=w(ks[9], (mid * K,)),
        w_post=w(ks[10], (mid * K, out_channels)), b_post=w(ks[11], (out_channels,)),
        w_down=w(ks[12], (in_channels, out_channels)), b_down=w(ks[13], (out_channels,)),
        s_down=s_down, t_down=t_down, s_bn=s_bn, t_bn=t_bn,
        # PyTorch __init__ zero-inits these; use small nonzero values to exercise paths.
        alpha=jnp.full((K,), 0.5, jnp.float32),
        beta=jnp.full((K,), 0.3, jnp.float32),
    )


if __name__ == "__main__":
    n, in_channels, t, v = 2, 4, 16, 16
    out_channels, K = 16, 3

    key = jax.random.PRNGKey(0)
    kx, kp = jax.random.split(key)
    x = jax.random.normal(kx, (n, in_channels, t, v), dtype=jnp.float32)
    params = make_params(kp, in_channels, out_channels, K, v)

    forward = jax.jit(dggcn_forward)
    out = jax.block_until_ready(forward(x, params))

    ref = jax.block_until_ready(dggcn_reference(x, params))
    assert out.shape == (n, out_channels, t, v)
    assert bool(jnp.all(jnp.isfinite(out)))
    max_err = float(jnp.max(jnp.abs(out - ref)))
    assert bool(jnp.allclose(out, ref, rtol=5e-3, atol=5e-3)), max_err

    print("KERNEL_OK")
</pallas_src>

<mosaic_0001>
module attributes {stable_mosaic.version = 11 : i64} {
  func.func @_dggcn_kernel(%arg0: i32, %arg1: memref<2xf32, #tpu.memory_space<smem>>, %arg2: memref<1x4x256xf32, #tpu.memory_space<vmem>>, %arg3: memref<64x4xf32, #tpu.memory_space<vmem>>, %arg4: memref<64x1xf32, #tpu.memory_space<vmem>>, %arg5: memref<64x1xf32, #tpu.memory_space<vmem>>, %arg6: memref<256x16xf32, #tpu.memory_space<vmem>>, %arg7: memref<3x16x16xf32, #tpu.memory_space<vmem>>, %arg8: memref<16x12xf32, #tpu.memory_space<vmem>>, %arg9: memref<16x1xf32, #tpu.memory_space<vmem>>, %arg10: memref<16x1xf32, #tpu.memory_space<vmem>>, %arg11: memref<1x16x256xf32, #tpu.memory_space<vmem>>) attributes {dimension_semantics = [#tpu.dimension_semantics<parallel>], iteration_bounds = array<i64: 2>, scalar_prefetch = 0 : i64, scratch_operands = 0 : i64, tpu.core_type = #tpu.core_type<tc>, window_params = [{transform_indices = @transform_0, window_bounds = array<i64: 2>}, {transform_indices = @transform_1, window_bounds = array<i64: 1, 4, 256>}, {pipeline_mode = #tpu.pipeline_mode<synchronous>, transform_indices = @transform_2, window_bounds = array<i64: 64, 4>}, {pipeline_mode = #tpu.pipeline_mode<synchronous>, transform_indices = @transform_3, window_bounds = array<i64: 64, 1>}, {pipeline_mode = #tpu.pipeline_mode<synchronous>, transform_indices = @transform_4, window_bounds = array<i64: 64, 1>}, {pipeline_mode = #tpu.pipeline_mode<synchronous>, transform_indices = @transform_5, window_bounds = array<i64: 256, 16>}, {pipeline_mode = #tpu.pipeline_mode<synchronous>, transform_indices = @transform_6, window_bounds = array<i64: 3, 16, 16>}, {pipeline_mode = #tpu.pipeline_mode<synchronous>, transform_indices = @transform_7, window_bounds = array<i64: 16, 12>}, {pipeline_mode = #tpu.pipeline_mode<synchronous>, transform_indices = @transform_8, window_bounds = array<i64: 16, 1>}, {pipeline_mode = #tpu.pipeline_mode<synchronous>, transform_indices = @transform_9, window_bounds = array<i64: 16, 1>}, {transform_indices = @transform_10, window_bounds = array<i64: 1, 16, 256>}]} {
    %c0 = arith.constant 0 : index
    %0 = memref.load %arg1[%c0] : memref<2xf32, #tpu.memory_space<smem>>
    %c1 = arith.constant 1 : index
    %1 = memref.load %arg1[%c1] : memref<2xf32, #tpu.memory_space<smem>>
    %c0_0 = arith.constant 0 : index
    %c0_1 = arith.constant 0 : index
    %c0_2 = arith.constant 0 : index
    %2 = vector.load %arg2[%c0_0, %c0_1, %c0_2] : memref<1x4x256xf32, #tpu.memory_space<vmem>>, vector<1x4x256xf32>
    %3 = vector.shape_cast %2 : vector<1x4x256xf32> to vector<4x256xf32>
    %c0_3 = arith.constant 0 : index
    %c0_4 = arith.constant 0 : index
    %4 = vector.load %arg3[%c0_3, %c0_4] : memref<64x4xf32, #tpu.memory_space<vmem>>, vector<64x4xf32>
    %cst = arith.constant dense<0.000000e+00> : vector<64x256xf32>
    %5 = tpu.matmul %4, %3, %cst {dimension_numbers = #tpu.dot_dimension_numbers<[1], [0], [0], [1], [0, 0, 1, 1], [], []>} : vector<64x4xf32>, vector<4x256xf32>, vector<64x256xf32> -> vector<64x256xf32>
    %c0_5 = arith.constant 0 : index
    %c0_6 = arith.constant 0 : index
    %6 = vector.load %arg4[%c0_5, %c0_6] : memref<64x1xf32, #tpu.memory_space<vmem>>, vector<64x1xf32>
    %7 = vector.broadcast %6 : vector<64x1xf32> to vector<64x256xf32>
    %8 = arith.mulf %5, %7 : vector<64x256xf32>
    %c0_7 = arith.constant 0 : index
    %c0_8 = arith.constant 0 : index
    %9 = vector.load %arg5[%c0_7, %c0_8] : memref<64x1xf32, #tpu.memory_space<vmem>>, vector<64x1xf32>
    %10 = vector.broadcast %9 : vector<64x1xf32> to vector<64x256xf32>
    %11 = arith.addf %8, %10 : vector<64x256xf32>
    %12 = vector.extract_strided_slice %11 {offsets = [0, 0], sizes = [16, 256], strides = [1, 1]} : vector<64x256xf32> to vector<16x256xf32>
    %13 = vector.extract_strided_slice %11 {offsets = [16, 0], sizes = [12, 256], strides = [1, 1]} : vector<64x256xf32> to vector<12x256xf32>
    %cst_9 = arith.constant 0.000000e+00 : f32
    %14 = vector.broadcast %cst_9 : f32 to vector<12x256xf32>
    %15 = arith.maximumf %13, %14 : vector<12x256xf32>
    %16 = vector.extract_strided_slice %11 {offsets = [32, 0], sizes = [12, 256], strides = [1, 1]} : vector<64x256xf32> to vector<12x256xf32>
    %c0_10 = arith.constant 0 : index
    %c0_11 = arith.constant 0 : index
    %17 = vector.load %arg6[%c0_10, %c0_11] : memref<256x16xf32, #tpu.memory_space<vmem>>, vector<256x16xf32>
    %cst_12 = arith.constant dense<0.000000e+00> : vector<12x16xf32>
    %18 = tpu.matmul %16, %17, %cst_12 {dimension_numbers = #tpu.dot_dimension_numbers<[1], [0], [0], [1], [0, 0, 1, 1], [], []>} : vector<12x256xf32>, vector<256x16xf32>, vector<12x16xf32> -> vector<12x16xf32>
    %19 = vector.extract_strided_slice %11 {offsets = [48, 0], sizes = [12, 256], strides = [1, 1]} : vector<64x256xf32> to vector<12x256xf32>
    %c0_13 = arith.constant 0 : index
    %c0_14 = arith.constant 0 : index
    %20 = vector.load %arg6[%c0_13, %c0_14] : memref<256x16xf32, #tpu.memory_space<vmem>>, vector<256x16xf32>
    %cst_15 = arith.constant dense<0.000000e+00> : vector<12x16xf32>
    %21 = tpu.matmul %19, %20, %cst_15 {dimension_numbers = #tpu.dot_dimension_numbers<[1], [0], [0], [1], [0, 0, 1, 1], [], []>} : vector<12x256xf32>, vector<256x16xf32>, vector<12x16xf32> -> vector<12x16xf32>
    %22 = vector.shape_cast %18 : vector<12x16xf32> to vector<3x4x16xf32>
    %23 = vector.shape_cast %21 : vector<12x16xf32> to vector<3x4x16xf32>
    %cst_16 = arith.constant dense<0.000000e+00> : vector<3x16x16xf32>
    %24 = tpu.matmul %22, %23, %cst_16 {dimension_numbers = #tpu.dot_dimension_numbers<[1], [1], [2], [2], [0, 0, 0, 2, 1, 2], [0], [0]>} : vector<3x4x16xf32>, vector<3x4x16xf32>, vector<3x16x16xf32> -> vector<3x16x16xf32>
    %cst_17 = arith.constant dense<0xFF800000> : vector<3x16xf32>
    %25 = vector.multi_reduction <maximumf>, %24, %cst_17 [1] : vector<3x16x16xf32> to vector<3x16xf32>
    %26 = vector.shape_cast %25 : vector<3x16xf32> to vector<3x1x16xf32>
    %27 = vector.broadcast %26 : vector<3x1x16xf32> to vector<3x16x16xf32>
    %28 = arith.subf %24, %27 : vector<3x16x16xf32>
    %29 = math.exp %28 : vector<3x16x16xf32>
    %cst_18 = arith.constant dense<0.000000e+00> : vector<3x16xf32>
    %30 = vector.multi_reduction <add>, %29, %cst_18 [1] : vector<3x16x16xf32> to vector<3x16xf32>
    %31 = vector.shape_cast %30 : vector<3x16xf32> to vector<3x1x16xf32>
    %32 = tpu.reciprocal %31 {approx = true} : vector<3x1x16xf32> -> vector<3x1x16xf32>
    %33 = vector.broadcast %32 : vector<3x1x16xf32> to vector<3x16x16xf32>
    %34 = arith.mulf %29, %33 : vector<3x16x16xf32>
    %35 = vector.broadcast %1 : f32 to vector<3x16x16xf32>
    %36 = arith.mulf %35, %34 : vector<3x16x16xf32>
    %c0_19 = arith.constant 0 : index
    %c0_20 = arith.constant 0 : index
    %c0_21 = arith.constant 0 : index
    %37 = vector.load %arg7[%c0_19, %c0_20, %c0_21] : memref<3x16x16xf32, #tpu.memory_space<vmem>>, vector<3x16x16xf32>
    %38 = arith.addf %36, %37 : vector<3x16x16xf32>
    %39 = vector.shape_cast %38 : vector<3x16x16xf32> to vector<3x1x16x16xf32>
    %40 = vector.shape_cast %39 : vector<3x1x16x16xf32> to vector<3x1x16x16xf32>
    %41 = vector.broadcast %40 : vector<3x1x16x16xf32> to vector<3x4x16x16xf32>
    %42 = vector.shape_cast %41 : vector<3x4x16x16xf32> to vector<12x16x16xf32>
    %43 = vector.shape_cast %18 : vector<12x16xf32> to vector<12x16x1xf32>
    %44 = vector.shape_cast %21 : vector<12x16xf32> to vector<12x1x16xf32>
    %45 = vector.broadcast %43 : vector<12x16x1xf32> to vector<12x16x16xf32>
    %46 = vector.broadcast %44 : vector<12x1x16xf32> to vector<12x16x16xf32>
    %47 = arith.subf %45, %46 : vector<12x16x16xf32>
    %48 = math.tanh %47 : vector<12x16x16xf32>
    %49 = vector.broadcast %0 : f32 to vector<12x16x16xf32>
    %50 = arith.mulf %49, %48 : vector<12x16x16xf32>
    %51 = arith.addf %50, %42 : vector<12x16x16xf32>
    %52 = vector.shape_cast %15 : vector<12x256xf32> to vector<12x16x16xf32>
    %cst_22 = arith.constant dense<0.000000e+00> : vector<12x16x16xf32>
    %53 = tpu.matmul %52, %51, %cst_22 {dimension_numbers = #tpu.dot_dimension_numbers<[2], [1], [1], [2], [0, 0, 0, 1, 1, 2], [0], [0]>} : vector<12x16x16xf32>, vector<12x16x16xf32>, vector<12x16x16xf32> -> vector<12x16x16xf32>
    %54 = vector.shape_cast %53 : vector<12x16x16xf32> to vector<12x256xf32>
    %c0_23 = arith.constant 0 : index
    %c0_24 = arith.constant 0 : index
    %55 = vector.load %arg8[%c0_23, %c0_24] : memref<16x12xf32, #tpu.memory_space<vmem>>, vector<16x12xf32>
    %cst_25 = arith.constant dense<0.000000e+00> : vector<16x256xf32>
    %56 = tpu.matmul %55, %54, %cst_25 {dimension_numbers = #tpu.dot_dimension_numbers<[1], [0], [0], [1], [0, 0, 1, 1], [], []>} : vector<16x12xf32>, vector<12x256xf32>, vector<16x256xf32> -> vector<16x256xf32>
    %c0_26 = arith.constant 0 : index
    %c0_27 = arith.constant 0 : index
    %57 = vector.load %arg9[%c0_26, %c0_27] : memref<16x1xf32, #tpu.memory_space<vmem>>, vector<16x1xf32>
    %58 = vector.broadcast %57 : vector<16x1xf32> to vector<16x256xf32>
    %59 = arith.mulf %56, %58 : vector<16x256xf32>
    %c0_28 = arith.constant 0 : index
    %c0_29 = arith.constant 0 : index
    %60 = vector.load %arg10[%c0_28, %c0_29] : memref<16x1xf32, #tpu.memory_space<vmem>>, vector<16x1xf32>
    %61 = vector.broadcast %60 : vector<16x1xf32> to vector<16x256xf32>
    %62 = arith.addf %59, %61 : vector<16x256xf32>
    %63 = arith.addf %62, %12 : vector<16x256xf32>
    %cst_30 = arith.constant 0.000000e+00 : f32
    %64 = vector.broadcast %cst_30 : f32 to vector<16x256xf32>
    %65 = arith.maximumf %63, %64 : vector<16x256xf32>
    %c0_31 = arith.constant 0 : index
    %c0_32 = arith.constant 0 : index
    %c0_33 = arith.constant 0 : index
    %66 = vector.load %arg11[%c0_31, %c0_32, %c0_33] : memref<1x16x256xf32, #tpu.memory_space<vmem>>, vector<1x16x256xf32>
    %67 = vector.shape_cast %66 : vector<1x16x256xf32> to vector<16x256xf32>
    %68 = vector.shape_cast %65 : vector<16x256xf32> to vector<1x16x256xf32>
    tpu.vector_store %arg11[%c0_31, %c0_32, %c0_33], %68 {strides = array<i32>} : memref<1x16x256xf32, #tpu.memory_space<vmem>>, vector<1x16x256xf32>,
    return
  }
  func.func @transform_0(%arg0: i32) -> i32 {
    %c0_i32 = arith.constant 0 : i32
    %c0_i32_0 = arith.constant 0 : i32
    return %c0_i32 : i32
  }
  func.func @transform_1(%arg0: i32) -> (i32, i32, i32) {
    %c0_i32 = arith.constant 0 : i32
    %c0_i32_0 = arith.constant 0 : i32
    %c0_i32_1 = arith.constant 0 : i32
    return %arg0, %c0_i32, %c0_i32_0 : i32, i32, i32
  }
  func.func @transform_2(%arg0: i32) -> (i32, i32) {
    %c0_i32 = arith.constant 0 : i32
    %c0_i32_0 = arith.constant 0 : i32
    %c0_i32_1 = arith.constant 0 : i32
    return %c0_i32, %c0_i32_0 : i32, i32
  }
  func.func @transform_3(%arg0: i32) -> (i32, i32) {
    %c0_i32 = arith.constant 0 : i32
    %c0_i32_0 = arith.constant 0 : i32
    %c0_i32_1 = arith.constant 0 : i32
    return %c0_i32, %c0_i32_0 : i32, i32
  }
  func.func @transform_4(%arg0: i32) -> (i32, i32) {
    %c0_i32 = arith.constant 0 : i32
    %c0_i32_0 = arith.constant 0 : i32
    %c0_i32_1 = arith.constant 0 : i32
    return %c0_i32, %c0_i32_0 : i32, i32
  }
  func.func @transform_5(%arg0: i32) -> (i32, i32) {
    %c0_i32 = arith.constant 0 : i32
    %c0_i32_0 = arith.constant 0 : i32
    %c0_i32_1 = arith.constant 0 : i32
    return %c0_i32, %c0_i32_0 : i32, i32
  }
  func.func @transform_6(%arg0: i32) -> (i32, i32, i32) {
    %c0_i32 = arith.constant 0 : i32
    %c0_i32_0 = arith.constant 0 : i32
    %c0_i32_1 = arith.constant 0 : i32
    %c0_i32_2 = arith.constant 0 : i32
    return %c0_i32, %c0_i32_0, %c0_i32_1 : i32, i32, i32
  }
  func.func @transform_7(%arg0: i32) -> (i32, i32) {
    %c0_i32 = arith.constant 0 : i32
    %c0_i32_0 = arith.constant 0 : i32
    %c0_i32_1 = arith.constant 0 : i32
    return %c0_i32, %c0_i32_0 : i32, i32
  }
  func.func @transform_8(%arg0: i32) -> (i32, i32) {
    %c0_i32 = arith.constant 0 : i32
    %c0_i32_0 = arith.constant 0 : i32
    %c0_i32_1 = arith.constant 0 : i32
    return %c0_i32, %c0_i32_0 : i32, i32
  }
  func.func @transform_9(%arg0: i32) -> (i32, i32) {
    %c0_i32 = arith.constant 0 : i32
    %c0_i32_0 = arith.constant 0 : i32
    %c0_i32_1 = arith.constant 0 : i32
    return %c0_i32, %c0_i32_0 : i32, i32
  }
  func.func @transform_10(%arg0: i32) -> (i32, i32, i32) {
    %c0_i32 = arith.constant 0 : i32
    %c0_i32_0 = arith.constant 0 : i32
    %c0_i32_1 = arith.constant 0 : i32
    return %arg0, %c0_i32, %c0_i32_0 : i32, i32, i32
  }
}

</mosaic_0001>

<bundles_post_ra>
// kernel: dggcn_forward.1
= control target key start
LH: loop header
LB: loop body
LE: loop exit
PB: predicated region body
PF: predicated region fallthrough
CT: control target
= control target key end

     0   :  { %15 = vsyncpa [#allocation3], 0  ;;  %s4562_s13 = smov 0   ;;  %s5764_s0 = inlined_call_operand.vmem [shape: f32[2], index: 0, kind: input, shape index: {}]   ;;  %s5765_s1 = inlined_call_operand.vmem [shape: f32[2,4,256], index: 1, kind: input, shape index: {}]   ;;  %s5766_s2 = inlined_call_operand.vmem [shape: f32[64,4], index: 2, kind: input, shape index: {}]   ;;  %s5767_s3 = inlined_call_operand.vmem [shape: f32[64,1], index: 3, kind: input, shape index: {}]   ;;  %s5768_s4 = inlined_call_operand.vmem [shape: f32[64,1], index: 4, kind: input, shape index: {}]   ;;  %s5769_s5 = inlined_call_operand.vmem [shape: f32[256,16], index: 5, kind: input, shape index: {}]   ;;  %s5770_s6 = inlined_call_operand.vmem [shape: f32[3,16,16], index: 6, kind: input, shape index: {}]   ;;  %s5771_s7 = inlined_call_operand.vmem [shape: f32[16,12], index: 7, kind: input, shape index: {}]   ;;  %s5772_s8 = inlined_call_operand.vmem [shape: f32[16,1], index: 8, kind: input, shape index: {}]   ;;  %s5773_s9 = inlined_call_operand.vmem [shape: f32[16,1], index: 9, kind: input, shape index: {}]   ;;  %s5774_s10 = inlined_call_operand.vmem [shape: f32[2,16,256], index: 10, kind: output, shape index: {}]  }
   0x1 LB: > { %s3882_s14 = sadd.s32 4294967295, %s4491_s13   ;;  %p3884_p0 = scmp.ge.s32.totalorder %s4491_s13, 1  ;;  %s4491_s13 = sphi %s4562_s13, %s21_s13  }
   0x2   : > { %p267_p1 = scmp.lt.s32.totalorder %s4491_s13, 3  ;;  %s280_s17 = sshll.u32 %s5764_s0, 4  ;;  %s281_s17 = int_to_ptr.vmem [resolvable:$true] %s280_s17 }
   0x3   : > { %p4303_p3 = scmp.eq.s32.totalorder %s3882_s14, 0  ;;  %s4466_s19 = scalar_lea.vmem %s281_s17, 16 }
   0x4   : > { %p4573_p2 = pnand %p3884_p0, %p267_p1  ;;  %p4467_p6 = scmp.ne.s32.totalorder %s281_s17, %s4466_s19 }
   0x5   : > { %p4474_p10 = scmp.lt.s32.totalorder %s281_s17, %s281_s17  ;;  %p4475_p11 = scmp.lt.s32.totalorder %s4466_s19, %s4466_s19 }
   0x6   : > { %p4299_p4 = pneg %p4573_p2 }
   0x7   : > { %p4476_p12 = por %p4475_p11, %p4474_p10 }
   0x8   : > { %p4300_p5 = pnand %p4303_p3, %p4299_p4 }
   0xa   : > { %p4468_p7 = pneg %p4300_p5 }
   0xc   : > { %p4469_p8 = pnand %p4468_p7, %p4467_p6 }
   0xe   : > { %p4470_p9 = pneg %p4469_p8 }
  0x10   : > { %p4477_p13 = pnand %p4476_p12, %p4470_p9 }
  0x12   : > { %4480 = shalt.err (!%p4477_p13)
}
  0x13   : > { %s4493_s20 = smov [#allocation2]   ;;  %325 = sbr.rel (%p4573_p2) target bundleno = 1527 (0x5f7), region = 60 }
  0x14   : > { %4302 = dma.vmem_to_smem (!%p4300_p5), %s281_s17, 16, %s4493_s20, [#allocation3]  }
  0x1a   : > { %4486 = dma.done.wait (%p4303_p3), [#allocation3], 16  }
  0x1b   : > { %4488 = vsyncadd (%p4303_p3), [#allocation3], 4294967280 }
  0x1c   : > { %331 = sfence }
  0x1d   : > { %p364_p0 = scmp.lt.s32.totalorder %s3882_s14, 1  ;;  %v5775_v0 = vmov 0.0   ;;  %v4495_v1 = vmov 0   ;;  %v534_v2 = vld [vmem:[%s5767_s3 + $0x20] sm:$0xff]  ;;  %v535_v3 = vld [vmem:[%s5767_s3 + $0x28] sm:$0xff]  ;;  %vm412_vm0 = vcmask 1043456  }
  0x1e   : > { %481 = vmatprep.mubr.f32.mxu1 %v5775_v0  ;;  %4327 = vset.pattern.permute.xlu0 %v4495_v1  ;;  %v598_v4 = vld [vmem:[%s5768_s4 + $0x20] sm:$0xff]  ;;  %v599_v5 = vld [vmem:[%s5768_s4 + $0x28] sm:$0xff]  ;;  %v680_v13 = vld [vmem:[%s5769_s5 + $0x90] sm:$0xff]  ;;  %vm387_vm1 = vcmask 31744   ;;  %s4497_s21 = smov 96   ;;  %s4498_s22 = smov 112  }
  0x1f   : > { %s5853_s14 = smov (!%p364_p0, %s3882_s14), 1  ;;  %4328 = vset.pattern.permute.xlu1 %v4495_v1  ;;  %560 = vperm.xlu0 %4327, %v534_v2   ;;  %v678_v6 = vld [vmem:[%s5769_s5 + $0x80] sm:$0xff]  ;;  %v679_v8 = vld [vmem:[%s5769_s5 + $0x88] sm:$0xff]  ;;  %v681_v14 = vld [vmem:[%s5769_s5 + $0x98] sm:$0xff]  ;;  %s4500_s24 = smov 80   ;;  %vm1195_vm2 = vcmask 130048  }
  0x20   : > { %s3943_s23 = sshll.u32 %s5853_s14, 3  ;;  %565 = vperm.xlu1 %4328, %v535_v3   ;;  %v662_v9 = vld [vmem:[%s5769_s5] sm:$0xff]  ;;  %v4177_v11 = vpack.c.bf16 %v679_v8, %v678_v6  ;;  %v663_v12 = vld [vmem:[%s5769_s5 + $0x8] sm:$0xff]  ;;  %v536_v16 = vld [vmem:[%s5767_s3 + $0x30] sm:$0xff]  ;;  %v4181_v19 = vpack.c.bf16 %v681_v14, %v680_v13  ;;  %s4501_s25 = smov 32   ;;  %vm3647_vm3 = vcmask 261120  }
  0x21   : > { %s368_s28 = scalar_lea.vmem %s5765_s1, %s3943_s23  ;;  %v377_v15 = vld [vmem:[%s5766_s2] sm:$0xff]  ;;  %v4179_v17 = vpack.c.bf16 %v663_v12, %v662_v9  ;;  %v600_v18 = vld [vmem:[%s5768_s4 + $0x30] sm:$0xff]  ;;  %v665_v21 = vld [vmem:[%s5769_s5 + $0x18] sm:$0xff]  ;;  %s4499_s23 = smov 64   ;;  %vm3650_vm4 = vcmask 392192   ;;  %vm3653_vm5 = vcmask 523264  }
  0x22   : > { %v376_v7 = vld [vmem:[%s368_s28] sm:$0xff]  ;;  %v664_v20 = vld [vmem:[%s5769_s5 + $0x10] sm:$0xff]  ;;  %4210 = vmatprep.subr.bf16.mxu0 %v4177_v11  ;;  %v683_v23 = vld [vmem:[%s5769_s5 + $0xa8] sm:$0xff]  ;;  %s4502_s26 = smov 48   ;;  %s4503_s27 = smov 16   ;;  %vm3656_vm6 = vcmask 654336  }
  0x23   : > { %v386_v10 = vcombine.high %v376_v7, %v376_v7  ;;  %624 = vperm.xlu0 %4327, %v598_v4   ;;  %v682_v22 = vld [vmem:[%s5769_s5 + $0xa0] sm:$0xff]  ;;  %v378_v24 = vld [vmem:[%s5766_s2 + $0x8] sm:$0xff]  ;;  %v537_v25 = vld [vmem:[%s5767_s3 + $0x38] sm:$0xff]  ;;  %v4183_v26 = vpack.c.bf16 %v665_v21, %v664_v20  ;;  %4212 = vmatpush3.bf16.msra.mxu0 %v4179_v17  ;;  %s374_s28 = sld [smem:[#allocation2]]  ;;  %s5264_s29 = sld [smem:[#allocation2 + $0x1]]  ;;  %vm3659_vm7 = vcmask 785408  }
  0x24   : > { %629 = vperm.xlu1 %4328, %v599_v5   ;;  %v601_v27 = vld [vmem:[%s5768_s4 + $0x38] sm:$0xff]  ;;  %v4185_v28 = vpack.c.bf16 %v683_v23, %v682_v22  ;;  %4214 = vmatprep.subr.bf16.mxu0 %v4181_v19  ;;  %v379_v29 = vld [vmem:[%s5766_s2 + $0x10] sm:$0xff]  ;;  %v381_v31 = vld [vmem:[%s5766_s2 + $0x20] sm:$0xff]  ;;  %vm3662_vm8 = vcmask 916480   ;;  %vm4506_vm9 = vmmov 1   ;;  %vm3681_vm11 = vcmask 97280  }
  0x25   : > { %3894 = vmatprep.subr.msk.mxu1 %vm412_vm0, %v386_v10  ;;  %v380_v30 = vld [vmem:[%s5766_s2 + $0x18] sm:$0xff]  ;;  %v382_v32 = vld [vmem:[%s5766_s2 + $0x28] sm:$0xff]  ;;  %v383_v33 = vld [vmem:[%s5766_s2 + $0x30] sm:$0xff] }
  0x26   : > { %3895 = vmatpush1.msk.msra.mxu1 %vm412_vm0, %v376_v7  ;;  %v384_v34 = vld [vmem:[%s5766_s2 + $0x38] sm:$0xff]  ;;  %v666_v35 = vld [vmem:[%s5769_s5 + $0x20] sm:$0xff]  ;;  %v667_v36 = vld [vmem:[%s5769_s5 + $0x28] sm:$0xff] }
  0x27   : > { %3896 = vmatmul.mubr.msk.f32.vlgmr.msra.gmra.mrb[0].mxu1 %vm387_vm1, %v377_v15  ;;  %4178 = vmatprep.subr.bf16.mxu1 %v4177_v11  ;;  %v4187_v37 = vpack.c.bf16 %v667_v36, %v666_v35  ;;  %v684_v38 = vld [vmem:[%s5769_s5 + $0xb0] sm:$0xff]  ;;  %v685_v39 = vld [vmem:[%s5769_s5 + $0xb8] sm:$0xff]  ;;  %v686_v44 = vld [vmem:[%s5769_s5 + $0xc0] sm:$0xff] }
  0x28   : > { %487 = vmatprep.mubr.f32.mxu1 %v5775_v0  ;;  %570 = vperm.xlu0 %4327, %v536_v16   ;;  %v4189_v40 = vpack.c.bf16 %v685_v39, %v684_v38  ;;  %v668_v41 = vld [vmem:[%s5769_s5 + $0x30] sm:$0xff]  ;;  %v669_v42 = vld [vmem:[%s5769_s5 + $0x38] sm:$0xff]  ;;  %v687_v45 = vld [vmem:[%s5769_s5 + $0xc8] sm:$0xff] }
  0x29   : > { %634 = vperm.xlu1 %4328, %v600_v18   ;;  %4180 = vmatpush3.bf16.msra.mxu1 %v4179_v17  ;;  %v4191_v43 = vpack.c.bf16 %v669_v42, %v668_v41  ;;  %v4193_v46 = vpack.c.bf16 %v687_v45, %v686_v44  ;;  %v670_v47 = vld [vmem:[%s5769_s5 + $0x40] sm:$0xff]  ;;  %v671_v48 = vld [vmem:[%s5769_s5 + $0x48] sm:$0xff]  ;;  %v688_v50 = vld [vmem:[%s5769_s5 + $0xd0] sm:$0xff]  ;;  %v1296_v45 = vlaneseq }
  0x2a   : > { %4182 = vmatprep.subr.bf16.mxu1 %v4181_v19  ;;  %4216 = vmatpush3.bf16.msra.mxu0 %v4183_v26  ;;  %v4195_v49 = vpack.c.bf16 %v671_v48, %v670_v47  ;;  %v689_v51 = vld [vmem:[%s5769_s5 + $0xd8] sm:$0xff]  ;;  %v672_v53 = vld [vmem:[%s5769_s5 + $0x50] sm:$0xff]  ;;  %v690_v56 = vld [vmem:[%s5769_s5 + $0xe0] sm:$0xff] }
  0x2b   : > { %3897 = vmatmul.mubr.msk.f32.gmra.mrb[2].mxu1 %vm387_vm1, %v378_v24  ;;  %4218 = vmatprep.subr.bf16.mxu0 %v4185_v28  ;;  %v4197_v52 = vpack.c.bf16 %v689_v51, %v688_v50  ;;  %v673_v54 = vld [vmem:[%s5769_s5 + $0x58] sm:$0xff]  ;;  %v691_v57 = vld [vmem:[%s5769_s5 + $0xe8] sm:$0xff]  ;;  %v674_v59 = vld [vmem:[%s5769_s5 + $0x60] sm:$0xff]  ;;  %v4768_v50 = vshrl.u32 %v1296_v45, 7 }
  0x2c   : > { %493 = vmatprep.mubr.f32.mxu1 %v5775_v0  ;;  %575 = vperm.xlu0 %4327, %v537_v25   ;;  %v4199_v55 = vpack.c.bf16 %v673_v54, %v672_v53  ;;  %v4201_v58 = vpack.c.bf16 %v691_v57, %v690_v56  ;;  %v675_v60 = vld [vmem:[%s5769_s5 + $0x68] sm:$0xff]  ;;  %v692_v62 = vld [vmem:[%s5769_s5 + $0xf0] sm:$0xff]  ;;  %v693_v63 = vld [vmem:[%s5769_s5 + $0xf8] sm:$0xff] }
  0x2d   : > { %639 = vperm.xlu1 %4328, %v601_v27   ;;  %4184 = vmatpush3.bf16.msra.mxu1 %v4183_v26  ;;  %v4203_v61 = vpack.c.bf16 %v675_v60, %v674_v59  ;;  %v4205_v1 = vpack.c.bf16 %v693_v63, %v692_v62  ;;  %v676_v2 = vld [vmem:[%s5769_s5 + $0x70] sm:$0xff]  ;;  %v677_v3 = vld [vmem:[%s5769_s5 + $0x78] sm:$0xff]  ;;  %v1298_v56 = vsub.s32 0, %v4768_v50  ;;  %v1320_v59 = vsub.s32 2, %v4768_v50  ;;  %vm4290_vm10 = vmpackc.low %vm412_vm0, %vm4506_vm9 }
  0x2e   : > { %4186 = vmatprep.subr.bf16.mxu1 %v4185_v28  ;;  %4220 = vmatpush3.bf16.msra.mxu0 %v4187_v37  ;;  %v4207_v4 = vpack.c.bf16 %v677_v3, %v676_v2  ;;  %v1331_v60 = vsub.s32 3, %v4768_v50 }
  0x2f   : > { %3898 = vmatmul.mubr.msk.f32.gmra.mrb[4].mxu1 %vm387_vm1, %v379_v29  ;;  %4222 = vmatprep.subr.bf16.mxu0 %v4189_v40 }
  0x30   : > { %499 = vmatprep.mubr.f32.mxu1 %v5775_v0 }
  0x31   : > { %4188 = vmatpush3.bf16.msra.mxu1 %v4187_v37 }
  0x32   : > { %4190 = vmatprep.subr.bf16.mxu1 %v4189_v40  ;;  %4224 = vmatpush3.bf16.msra.mxu0 %v4191_v43 }
  0x33   : > { %3899 = vmatmul.mubr.msk.f32.gmra.mrb[6].mxu1 %vm387_vm1, %v380_v30  ;;  %4226 = vmatprep.subr.bf16.mxu0 %v4193_v46 }
  0x34   : > { %505 = vmatprep.mubr.f32.mxu1 %v5775_v0 }
  0x35   : > { %4192 = vmatpush3.bf16.msra.mxu1 %v4191_v43 }
  0x36   : > { %4194 = vmatprep.subr.bf16.mxu1 %v4193_v46  ;;  %4228 = vmatpush3.bf16.msra.mxu0 %v4195_v49  ;;  %v4496_v46 = vmov 1966171168  }
  0x37   : > { %3900 = vmatmul.mubr.msk.f32.gmra.mrb[8].mxu1 %vm387_vm1, %v381_v31  ;;  %4230 = vmatprep.subr.bf16.mxu0 %v4197_v52  ;;  %v1429_v47 = vunpack.c.l.s4 %v4496_v46 }
  0x38   : > { %511 = vmatprep.mubr.f32.mxu1 %v5775_v0 }
  0x39   : > { %4196 = vmatpush3.bf16.msra.mxu1 %v4195_v49 }
  0x3a   : > { %4198 = vmatprep.subr.bf16.mxu1 %v4197_v52  ;;  %4232 = vmatpush3.bf16.msra.mxu0 %v4199_v55  ;;  %v1430_v52 = vunpack.c.0.s8 %v1429_v47 }
  0x3b   : > { %3901 = vmatmul.mubr.msk.f32.gmra.mrb[10].mxu1 %vm387_vm1, %v382_v32  ;;  %4234 = vmatprep.subr.bf16.mxu0 %v4201_v58 }
  0x3c   : > { %517 = vmatprep.mubr.f32.mxu1 %v5775_v0 }
  0x3d   : > { %4200 = vmatpush3.bf16.msra.mxu1 %v4199_v55 }
  0x3e   : > { %4202 = vmatprep.subr.bf16.mxu1 %v4201_v58  ;;  %4236 = vmatpush3.bf16.msra.mxu0 %v4203_v61  ;;  %v1309_v58 = vsub.s32 1, %v4768_v50 }
  0x3f   : > { %3902 = vmatmul.mubr.msk.f32.gmra.mrb[12].mxu1 %vm387_vm1, %v383_v33  ;;  %4238 = vmatprep.subr.bf16.mxu0 %v4205_v1 }
  0x40   : > { %523 = vmatprep.mubr.f32.mxu1 %v5775_v0  ;;  %v4505_v0 = vmov 1934713408  }
  0x41   : > { %4204 = vmatpush3.bf16.msra.mxu1 %v4203_v61  ;;  %v1433_v61 = vsub.s32 %v1430_v52, %v4768_v50  ;;  %v597_v52 = vld [vmem:[%s5768_s4 + $0x18] sm:$0xff] }
  0x42   : > { %4206 = vmatprep.subr.bf16.mxu1 %v4205_v1  ;;  %4240 = vmatpush3.bf16.msra.mxu0 %v4207_v4 }
  0x43   : > { %3903 = vmatmul.mubr.msk.f32.gmra.mrb[14].mxu1 %vm387_vm1, %v384_v34 }
  0x45   : > { %4208 = vmatpush3.bf16.msra.mxu1 %v4207_v4 }
  0x9e   : > { %v561_v11 = vpop.permute.xlu0 %560 }
  0x9f   : > { %v566_v12 = vpop.permute.xlu1 %565 }
  0xa2   : > { %v625_v15 = vpop.permute.xlu0 %624 }
  0xa3   : > { %v630_v19 = vpop.permute.xlu1 %629 }
  0xa7   : > { %v571_v26 = vpop.permute.xlu0 %570 }
  0xa8   : > { %v635_v29 = vpop.permute.xlu1 %634 }
  0xab   : > { %v576_v35 = vpop.permute.xlu0 %575 }
  0xac   : > { %v640_v41 = vpop.permute.xlu1 %639 }
  0xfa   : > { %v4752_v5 = vpop.f32.mrb[0].mxu1 }
  0xfb   : > { %5790 = vst [vmem:[#allocation5_spill] sm:$0xff] %v4752_v5  ;;  %v4754_v6 = vpop.f32.mrb[1].mxu1 }
  0xfc   : > { %5791 = vst [vmem:[#allocation6_spill] sm:$0xff] %v4754_v6 }
  0xfe   : > { %v4756_v7 = vpop.f32.mrb[2].mxu1 }
  0xff   : > { %5792 = vst [vmem:[#allocation7_spill] sm:$0xff] %v4756_v7  ;;  %v4758_v8 = vpop.f32.mrb[3].mxu1 }
 0x100   : > { %5793 = vst [vmem:[#allocation8_spill] sm:$0xff] %v4758_v8 }
 0x102   : > { %v4760_v9 = vpop.f32.mrb[4].mxu1 }
 0x103   : > { %v4762_v10 = vpop.f32.mrb[5].mxu1 }
 0x106   : > { %v4764_v13 = vpop.f32.mrb[6].mxu1 }
 0x107   : > { %v4766_v14 = vpop.f32.mrb[7].mxu1 }
 0x10a   : > { %v507_v16 = vpop.f32.mrb[8].mxu1 }
 0x10b   : > { %v586_v17 = vmul.f32 %v561_v11, %v507_v16  ;;  %v509_v18 = vpop.f32.mrb[9].mxu1 }
 0x10c   : > { %v587_v20 = vmul.f32 %v561_v11, %v509_v18 }
 0x10d   : > { %v650_v23 = vadd.f32 %v625_v15, %v586_v17 }
 0x10e   : > { %v651_v21 = vadd.f32 %v625_v15, %v587_v20  ;;  %v513_v22 = vpop.f32.mrb[10].mxu1 }
 0x10f   : > { %v588_v24 = vmul.f32 %v566_v12, %v513_v22  ;;  %v515_v25 = vpop.f32.mrb[11].mxu1 }
 0x110   : > { %v589_v27 = vmul.f32 %v566_v12, %v515_v25  ;;  %758 = vmatprep.mubr.f32.mxu1 %v651_v21 }
 0x111   : > { %v652_v28 = vadd.f32 %v630_v19, %v588_v24  ;;  %759 = vmatmul.mubr.f32.vlgmr.msra.gmra.mrb[16].mxu1 %v650_v23 }
 0x112   : > { %v653_v30 = vadd.f32 %v630_v19, %v589_v27  ;;  %v519_v31 = vpop.f32.mrb[12].mxu1 }
 0x113   : > { %v590_v32 = vmul.f32 %v571_v26, %v519_v31  ;;  %v521_v33 = vpop.f32.mrb[13].mxu1 }
 0x114   : > { %v591_v34 = vmul.f32 %v571_v26, %v521_v33  ;;  %763 = vmatprep.mubr.f32.mxu1 %v653_v30 }
 0x115   : > { %764 = vmatmul.mubr.f32.gmra.mrb[18].mxu1 %v652_v28  ;;  %v654_v38 = vadd.f32 %v635_v29, %v590_v32 }
 0x116   : > { %v525_v36 = vpop.f32.mrb[14].mxu1  ;;  %v655_v37 = vadd.f32 %v635_v29, %v591_v34 }
 0x117   : > { %v592_v39 = vmul.f32 %v576_v35, %v525_v36  ;;  %v527_v40 = vpop.f32.mrb[15].mxu1 }
 0x118   : > { %v593_v42 = vmul.f32 %v576_v35, %v527_v40  ;;  %833 = vmatprep.mubr.f32.mxu0 %v655_v37 }
 0x119   : > { %834 = vmatmul.mubr.f32.vlgmr.msra.gmra.mrb[0].mxu0 %v654_v38  ;;  %v656_v44 = vadd.f32 %v640_v41, %v592_v39 }
 0x11a   : > { %v657_v43 = vadd.f32 %v640_v41, %v593_v42 }
 0x11c   : > { %838 = vmatprep.mubr.f32.mxu0 %v657_v43 }
 0x11d   : > { %839 = vmatmul.mubr.f32.gmra.mrb[2].mxu0 %v656_v44 }
 0x1e4   : > { %v3977_v48 = vpop.f32.mrb[16].mxu1 }
 0x1e5   : > { %v3978_v49 = vpop.f32.mrb[17].mxu1 }
 0x1e6   : > { %v4770_v51 = vadd.f32 %v3978_v49, %v3977_v48  ;;  %v596_v48 = vld [vmem:[%s5768_s4 + $0x10] sm:$0xff]  ;;  %v533_v49 = vld [vmem:[%s5767_s3 + $0x18] sm:$0xff] }
 0x1e8   : > { %850 = vxpose.xlu0.b32.start.end [1/1] (short) (narrow) %v4770_v51, 16  ;;  %v3980_v53 = vpop.f32.mrb[18].mxu1  ;;  %v845_v54 = vcombine.high %v4770_v51, %v4770_v51 }
 0x1e9   : > { %v3981_v55 = vpop.f32.mrb[19].mxu1 }
 0x1ea   : > { %v3982_v57 = vadd.f32 %v3981_v55, %v3980_v53  ;;  %965 = vxpose.xlu1.b32.start.end [1/1] (short) (narrow) %v845_v54, 16  ;;  %v1299_v53 = vrot.slane %v4770_v51, %v1298_v56  ;;  %v532_v54 = vld [vmem:[%s5767_s3 + $0x10] sm:$0xff]  ;;  %v1310_v55 = vrot.slane %v4770_v51, %v1309_v58 }
 0x1ec   : > { %v4015_v62 = vpop.f32.mrb[0].mxu0  ;;  %v4780_v63 = vrot.slane %v3982_v57, %v1298_v56  ;;  %v4782_v1 = vrot.slane %v3982_v57, %v1309_v58  ;;  %v4786_v2 = vrot.slane %v3982_v57, %v1320_v59  ;;  %v4790_v3 = vrot.slane %v3982_v57, %v1331_v60 }
 0x1ed   : > { %v4016_v4 = vpop.f32.mrb[1].mxu0  ;;  %1080 = vxpose.xlu0.b32.start.end [1/1] (short) (narrow) %v3982_v57, 16  ;;  %v1321_v57 = vrot.slane %v4770_v51, %v1320_v59  ;;  %v1353_v58 = vsub.s32 5, %v4768_v50  ;;  %v1364_v59 = vsub.s32 6, %v4768_v50 }
 0x1ee   : > { %v4017_v11 = vadd.f32 %v4016_v4, %v4015_v62 }
 0x1ef   : > { %v1354_v4 = vrot.slane %v4770_v51, %v1353_v58 }
 0x1f0   : > { %v4018_v12 = vpop.f32.mrb[2].mxu0  ;;  %4078 = vmatprep.subr.msk.mxu1 %vm412_vm0, %v4017_v11  ;;  %v849_v15 = vcombine.high %v4017_v11, %v4017_v11  ;;  %v1434_v16 = vrot.slane %v4017_v11, %v1433_v61 }
 0x1f1   : > { %v4019_v17 = vpop.f32.mrb[3].mxu0  ;;  %4079 = vmatpush3.msk.msra.mxu1 %vm412_vm0, %v4017_v11  ;;  %v1365_v11 = vrot.slane %v4770_v51, %v1364_v59 }
 0x1f2   : > { %v4794_v18 = vadd.f32 %v4019_v17, %v4018_v12  ;;  %4083 = vmatprep.subr.msk.mxu0 %vm412_vm0, %v849_v15  ;;  %v1450_v19 = vrot.slane %v1434_v16, %v1433_v61  ;;  %v1442_v20 = vcombine.high %v1434_v16, %v1434_v16  ;;  %v1441_v21 = vrot.slane %v849_v15, %v1433_v61 }
 0x1f3   : > { %4084 = vmatpush3.msk.msra.mxu0 %vm412_vm0, %v849_v15 }
 0x1f4   : > { %v1482_v22 = vrot.slane %v4794_v18, %v1433_v61  ;;  %4088 = vmatprep.subr.msk.mxu1 %vm412_vm0, %v4794_v18  ;;  %v4801_v23 = vrot.slane %v1450_v19, %v1298_v56  ;;  %v1464_v24 = vrot.slane %v1442_v20, %v1433_v61  ;;  %v1472_v25 = vcombine.high %v1450_v19, %v1450_v19 }
 0x1f5   : > { %v1457_v26 = vrot.slane %v1441_v21, %v1433_v61  ;;  %v1443_v27 = vcombine.high %v1441_v21, %v1441_v21 }
 0x1f6   : > { %v4803_v28 = vrot.slane %v1464_v24, %v1298_v56  ;;  %v4805_v29 = vrot.slane %v1472_v25, %v1298_v56  ;;  %v1474_v30 = vcombine.high %v1464_v24, %v1464_v24  ;;  %v1490_v31 = vrot.slane %v1482_v22, %v1433_v61 }
 0x1f7   : > { %v4807_v32 = vrot.slane %v1457_v26, %v1298_v56  ;;  %v1471_v33 = vrot.slane %v1443_v27, %v1433_v61  ;;  %v1473_v34 = vcombine.high %v1457_v26, %v1457_v26  ;;  %v1483_v35 = vcombine.high %v1482_v22, %v1482_v22 }
 0x1f8   : > { %v4809_v36 = vrot.slane %v1474_v30, %v1298_v56  ;;  %v4811_v37 = vrot.slane %v1490_v31, %v1298_v56  ;;  %v1498_v38 = vcombine.high %v1490_v31, %v1490_v31 }
 0x1f9   : > { %v4813_v39 = vrot.slane %v1471_v33, %v1298_v56  ;;  %v4815_v40 = vrot.slane %v1473_v34, %v1298_v56  ;;  %v1475_v41 = vcombine.high %v1471_v33, %v1471_v33  ;;  %v1497_v42 = vrot.slane %v1483_v35, %v1433_v61 }
 0x1fa   : > { %v4817_v43 = vrot.slane %v1498_v38, %v1298_v56  ;;  %v1342_v61 = vsub.s32 4, %v4768_v50 }
 0x1fb   : > { %v4819_v44 = vrot.slane %v1475_v41, %v1298_v56  ;;  %v4821_v45 = vrot.slane %v1497_v42, %v1298_v56  ;;  %v1499_v46 = vcombine.high %v1497_v42, %v1497_v42 }
 0x1fc   : > { %v1343_v62 = vrot.slane %v4770_v51, %v1342_v61 }
 0x1fd   : > { %v4823_v47 = vrot.slane %v1499_v46, %v1298_v56  ;;  %v1332_v56 = vrot.slane %v4770_v51, %v1331_v60  ;;  %v1375_v60 = vsub.s32 7, %v4768_v50 }
 0x1ff   : > { %v1376_v12 = vrot.slane %v4770_v51, %v1375_v60 }
 0x20c   : > { %614 = vperm.xlu1 %4328, %v596_v48  }
 0x210   : > { %555 = vperm.xlu1 %4328, %v533_v49  }
 0x214   : > { %619 = vperm.xlu1 %4328, %v597_v52  }
 0x218   : > { %1305 = vbcast.lane.b32.xlu1 %v1299_v53, 264 }
 0x21a   : > { %550 = vperm.xlu0 %4327, %v532_v54  }
 0x21c   : > { %1316 = vbcast.lane.b32.xlu1 %v1310_v55, 264 }
 0x21e   : > { %1301 = vbcast.lane.b32.xlu0 %v1299_v53, 256 }
 0x220   : > { %1327 = vbcast.lane.b32.xlu1 %v1321_v57, 264 }
 0x222   : > { %1312 = vbcast.lane.b32.xlu0 %v1310_v55, 256 }
 0x224   : > { %1338 = vbcast.lane.b32.xlu1 %v1332_v56, 264 }
 0x226   : > { %1323 = vbcast.lane.b32.xlu0 %v1321_v57, 256 }
 0x228   : > { %1349 = vbcast.lane.b32.xlu1 %v1343_v62, 264 }
 0x22a   : > { %1334 = vbcast.lane.b32.xlu0 %v1332_v56, 256 }
 0x22c   : > { %1360 = vbcast.lane.b32.xlu1 %v1354_v4, 264 }
 0x22e   : > { %1345 = vbcast.lane.b32.xlu0 %v1343_v62, 256 }
 0x230   : > { %1371 = vbcast.lane.b32.xlu1 %v1365_v11, 264 }
 0x232   : > { %1356 = vbcast.lane.b32.xlu0 %v1354_v4, 256 }
 0x234   : > { %1382 = vbcast.lane.b32.xlu1 %v1376_v12, 264 }
 0x236   : > { %1367 = vbcast.lane.b32.xlu0 %v1365_v11, 256 }
 0x23a   : > { %1378 = vbcast.lane.b32.xlu0 %v1376_v12, 256 }
 0x268   : > { %v866_v15 = vpop.trf.xlu0 }
 0x269   : > { %4080 = vmatprep.mubr.msk.f32.mxu1 %vm387_vm1, %v866_v15 }
 0x26a   : > { %v981_v16 = vpop.trf.xlu1 }
 0x26b   : > { %4085 = vmatprep.mubr.msk.f32.mxu0 %vm387_vm1, %v981_v16 }
 0x26c   : > { %v867_v17 = vpop.trf.xlu0 }
 0x26d   : > { %4081 = vmatmul.mubr.msk.f32.vlgmr.msra.gmra.mrb[20].mxu1 %vm387_vm1, %v867_v17 }
 0x26e   : > { %4089 = vmatpush3.msk.msra.mxu1 %vm412_vm0, %v4794_v18  ;;  %v982_v19 = vpop.trf.xlu1 }
 0x26f   : > { %4086 = vmatmul.mubr.msk.f32.vlgmr.msra.gmra.mrb[4].mxu0 %vm387_vm1, %v982_v19 }
 0x270   : > { %v1096_v20 = vpop.trf.xlu0 }
 0x271   : > { %4090 = vmatprep.mubr.msk.f32.mxu1 %vm387_vm1, %v1096_v20 }
 0x274   : > { %v1097_v51 = vpop.trf.xlu0 }
 0x275   : > { %4091 = vmatmul.mubr.msk.f32.vlgmr.msra.gmra.mrb[22].mxu1 %vm387_vm1, %v1097_v51 }
 0x28b   : > { %v615_v21 = vpop.permute.xlu1 %614 }
 0x28f   : > { %v4861_v22 = vpop.permute.xlu1 %555 }
 0x290   : > { %v584_v17 = vmul.f32 %v4861_v22, %v4764_v13 }
 0x293   : > { %v4863_v24 = vpop.permute.xlu1 %619 }
 0x294   : > { %v648_v20 = vadd.f32 %v4863_v24, %v584_v17 }
 0x296   : > { %v4958_v13 = vmax.f32 %v648_v20, 0.0 }
 0x297   : > { %v4865_v25 = vpop.permute.xlu1 %1305 }
 0x298   : > { %v5800_v7 = vsub.f32 %v4865_v25, %v4801_v23 }
 0x299   : > { %v551_v18 = vpop.permute.xlu0 %550 }
 0x29a   : > { %v582_v27 = vmul.f32 %v551_v18, %v4760_v9  ;;  %v583_v46 = vmul.f32 %v551_v18, %v4762_v10  ;;  %4400 = vtanh.f32 %v5800_v7 }
 0x29b   : > { %v4870_v30 = vpop.permute.xlu1 %1316 }
 0x29c   : > { %v646_v31 = vadd.f32 %v615_v21, %v582_v27  ;;  %v647_v54 = vadd.f32 %v615_v21, %v583_v46  ;;  %v585_v21 = vmul.f32 %v4861_v22, %v4766_v14  ;;  %v4504_v14 = vmov 1983009808  }
 0x29d   : > { %v4874_v34 = vpop.permute.xlu0 %1301  ;;  %v5801_v5 = vsub.f32 %v4870_v30, %v4803_v28 }
 0x29e   : > { %v4876_v35 = vmax.f32 %v646_v31, 0.0  ;;  %v4915_v61 = vmax.f32 %v647_v54, 0.0  ;;  %v649_v18 = vadd.f32 %v4863_v24, %v585_v21 }
 0x29f   : > { %v4880_v41 = vpop.permute.xlu1 %1327  ;;  %4402 = vtanh.f32 %v5801_v5 }
 0x2a0   : > { %1665 = vrot.lane.b32.xlu1 %v4876_v35, %s4497_s21  ;;  %1659 = vrot.lane.b32.xlu0 %v4876_v35, %s4498_s22  ;;  %v4975_v27 = vmax.f32 %v649_v18, 0.0  ;;  %v5803_v30 = vsub.f32 %v4880_v41, %v4805_v29 }
 0x2a1   : > { %v4888_v9 = vpop.permute.xlu0 %1312 }
 0x2a3   : > { %v4893_v49 = vpop.permute.xlu1 %1338 }
 0x2a4   : > { %1677 = vrot.lane.b32.xlu1 %v4876_v35, %s4499_s23  ;;  %1671 = vrot.lane.b32.xlu0 %v4876_v35, %s4500_s24 }
 0x2a5   : > { %v4901_v53 = vpop.permute.xlu0 %1323 }
 0x2a7   : > { %v4905_v55 = vpop.permute.xlu1 %1349 }
 0x2a8   : > { %1689 = vrot.lane.b32.xlu1 %v4876_v35, %s4501_s25  ;;  %1683 = vrot.lane.b32.xlu0 %v4876_v35, %s4502_s26 }
 0x2a9   : > { %v4913_v56 = vpop.permute.xlu0 %1334 }
 0x2ab   : > { %v4919_v58 = vpop.permute.xlu1 %1360 }
 0x2ac   : > { %1703 = vrot.lane.b32.xlu1 %v4915_v61, %s4498_s22  ;;  %1695 = vrot.lane.b32.xlu0 %v4876_v35, %s4503_s27 }
 0x2ad   : > { %v4927_v59 = vpop.permute.xlu0 %1345 }
 0x2af   : > { %v4931_v60 = vpop.permute.xlu1 %1371 }
 0x2b0   : > { %1715 = vrot.lane.b32.xlu1 %v4915_v61, %s4500_s24  ;;  %1709 = vrot.lane.b32.xlu0 %v4915_v61, %s4497_s21 }
 0x2b1   : > { %v4939_v15 = vpop.permute.xlu0 %1356 }
 0x2b4   : > { %1727 = vrot.lane.b32.xlu1 %v4915_v61, %s4502_s26  ;;  %1721 = vrot.lane.b32.xlu0 %v4915_v61, %s4499_s23 }
 0x2b5   : > { %v4949_v19 = vpop.permute.xlu0 %1367 }
 0x2b8   : > { %1739 = vrot.lane.b32.xlu1 %v4915_v61, %s4503_s27  ;;  %1733 = vrot.lane.b32.xlu0 %v4915_v61, %s4501_s25 }
 0x2bc   : > { %1667 = vrot.lane.b32.xlu1 %v4958_v13, %s4497_s21  ;;  %1661 = vrot.lane.b32.xlu0 %v4958_v13, %s4498_s22 }
 0x2c0   : > { %1679 = vrot.lane.b32.xlu1 %v4958_v13, %s4499_s23  ;;  %1673 = vrot.lane.b32.xlu0 %v4958_v13, %s4500_s24 }
 0x2c4   : > { %1691 = vrot.lane.b32.xlu1 %v4958_v13, %s4501_s25  ;;  %1685 = vrot.lane.b32.xlu0 %v4958_v13, %s4502_s26 }
 0x2c8   : > { %1705 = vrot.lane.b32.xlu1 %v4975_v27, %s4498_s22  ;;  %1697 = vrot.lane.b32.xlu0 %v4958_v13, %s4503_s27 }
 0x2cc   : > { %1393 = vbcast.lane.b32.xlu1 %v4780_v63, 264  ;;  %1389 = vbcast.lane.b32.xlu0 %v4780_v63, 256  ;;  %v1748_v63 = vunpack.c.l.s4 %v4504_v14  ;;  %v1812_v14 = vunpack.c.l.s4 %v4505_v0 }
 0x2d0   : > { %1404 = vbcast.lane.b32.xlu1 %v4782_v1, 264  ;;  %1400 = vbcast.lane.b32.xlu0 %v4782_v1, 256  ;;  %v5001_v1 = vpop.permute.xlu1 %1382 }
 0x2d4   : > { %1415 = vbcast.lane.b32.xlu1 %v4786_v2, 264  ;;  %1411 = vbcast.lane.b32.xlu0 %v4786_v2, 256  ;;  %v5003_v2 = vpop.permute.xlu0 %1378 }
 0x2d8   : > { %1426 = vbcast.lane.b32.xlu1 %v4790_v3, 264  ;;  %1422 = vbcast.lane.b32.xlu0 %v4790_v3, 256  ;;  %v1749_v3 = vunpack.c.0.s8 %v1748_v63 }
 0x2da   : > { %v5006_v31 = vsub.s32 %v1749_v3, %v4768_v50 }
 0x2dc   : > { %1717 = vrot.lane.b32.xlu1 %v4975_v27, %s4500_s24  ;;  %1711 = vrot.lane.b32.xlu0 %v4975_v27, %s4497_s21 }
 0x2e0   : > { %1729 = vrot.lane.b32.xlu1 %v4975_v27, %s4502_s26  ;;  %1723 = vrot.lane.b32.xlu0 %v4975_v27, %s4499_s23 }
 0x2e4   : > { %1741 = vrot.lane.b32.xlu1 %v4975_v27, %s4503_s27  ;;  %1735 = vrot.lane.b32.xlu0 %v4975_v27, %s4501_s25 }
 0x312   : > { %v1660_v22 = vpop.permute.xlu0 %1659  ;;  %v1666_v24 = vpop.permute.xlu1 %1665 }
 0x313   : > { %v1745_v46 = vcombine.low %v4876_v35, %v1666_v24  ;;  %v1746_v54 = vcombine.high %v4876_v35, %v1666_v24  ;;  %v1813_v35 = vunpack.c.0.s8 %v1812_v14 }
 0x315   : > { %v1753_v51 = vrot.slane %v1745_v46, %v5006_v31  ;;  %v1760_v16 = vrot.slane %v1746_v54, %v5006_v31  ;;  %v5015_v0 = vsub.s32 %v1813_v35, %v4768_v50 }
 0x316   : > { %v1672_v17 = vpop.permute.xlu0 %1671  ;;  %v1678_v20 = vpop.permute.xlu1 %1677 }
 0x317   : > { %v1761_v21 = vcombine.low %v1660_v22, %v1672_v17  ;;  %v1762_v18 = vcombine.high %v1660_v22, %v1672_v17 }
 0x319   : > { %v1769_v63 = vrot.slane %v1761_v21, %v5006_v31  ;;  %v1776_v12 = vrot.slane %v1762_v18, %v5006_v31 }
 0x31a   : > { %v1684_v3 = vpop.permute.xlu0 %1683  ;;  %v1690_v11 = vpop.permute.xlu1 %1689 }
 0x31b   : > { %v1810_v4 = vcombine.high %v1753_v51, %v1769_v63  ;;  %v1825_v62 = vcombine.low %v1760_v16, %v1776_v12  ;;  %v1826_v57 = vcombine.high %v1760_v16, %v1776_v12  ;;  %v1778_v24 = vcombine.high %v1678_v20, %v1690_v11 }
 0x31c   : > { %v1777_v10 = vcombine.low %v1678_v20, %v1690_v11  ;;  %v1809_v46 = vcombine.low %v1753_v51, %v1769_v63 }
 0x31d   : > { %v1792_v21 = vrot.slane %v1778_v24, %v5006_v31 }
 0x31e   : > { %v1696_v52 = vpop.permute.xlu0 %1695  ;;  %v1785_v54 = vrot.slane %v1777_v10, %v5006_v31  ;;  %v1817_v11 = vrot.slane %v1809_v46, %v5015_v0  ;;  %v5035_v63 = vpop.permute.xlu1 %1703 }
 0x31f   : > { %v1793_v22 = vcombine.low %v1684_v3, %v1696_v52  ;;  %v1794_v17 = vcombine.high %v1684_v3, %v1696_v52  ;;  %v5023_v52 = vrot.slane %v1810_v4, %v5015_v0  ;;  %v5041_v3 = vrot.slane %v1826_v57, %v5015_v0 }
 0x321   : > { %v1801_v18 = vrot.slane %v1793_v22, %v5006_v31  ;;  %v1808_v48 = vrot.slane %v1794_v17, %v5006_v31  ;;  %5794 = vst [vmem:[#allocation9_spill] sm:$0xff] %v5023_v52  ;;  %5799 = vst [vmem:[#allocation14_spill] sm:$0xff] %v5041_v3  ;;  %v5802_v3 = vsub.f32 %v4874_v34, %v4801_v23 }
 0x322   : > { %v5055_v17 = vpop.permute.xlu0 %1709  ;;  %v5057_v46 = vpop.permute.xlu1 %1715 }
 0x323   : > { %v1841_v42 = vcombine.low %v1785_v54, %v1801_v18  ;;  %v1842_v12 = vcombine.high %v1785_v54, %v1801_v18  ;;  %v1857_v16 = vcombine.low %v1792_v21, %v1808_v48  ;;  %v1858_v14 = vcombine.high %v1792_v21, %v1808_v48 }
 0x324   : > { %v5038_v48 = vrot.slane %v1825_v62, %v5015_v0  ;;  %4404 = vtanh.f32 %v5802_v3  ;;  %v5805_v3 = vsub.f32 %v4893_v49, %v4809_v36 }
 0x325   : > { %v1849_v50 = vrot.slane %v1841_v42, %v5015_v0  ;;  %v5027_v51 = vrot.slane %v1842_v12, %v5015_v0  ;;  %v5030_v10 = vrot.slane %v1857_v16, %v5015_v0  ;;  %v5033_v20 = vrot.slane %v1858_v14, %v5015_v0 }
 0x326   : > { %5798 = vst [vmem:[#allocation13_spill] sm:$0xff] %v5038_v48  ;;  %v5061_v21 = vpop.permute.xlu0 %1721  ;;  %v5063_v18 = vpop.permute.xlu1 %1727  ;;  %4406 = vtanh.f32 %v5803_v30  ;;  %v5806_v48 = vsub.f32 %v4901_v53, %v4805_v29  ;;  %v5809_v29 = vsub.f32 %v4919_v58, %v4813_v39  ;;  %v1575_v58 = vsub.f32 %v5001_v1, %v4819_v44 }
 0x327   : > { %5795 = vst [vmem:[#allocation10_spill] sm:$0xff] %v5027_v51  ;;  %5796 = vst [vmem:[#allocation11_spill] sm:$0xff] %v5030_v10  ;;  %v1873_v4 = vcombine.low %v1817_v11, %v1849_v50  ;;  %v1874_v42 = vcombine.high %v1817_v11, %v1849_v50 }
 0x328   : > { %5797 = vst [vmem:[#allocation12_spill] sm:$0xff] %v5033_v20 }
 0x329   : > { %4097 = vmatprep.mubr.msk.f32.mxu0 %vm1195_vm2, %v1873_v4  ;;  %4104 = vmatprep.mubr.msk.f32.mxu1 %vm1195_vm2, %v1874_v42 }
 0x32a   : > { %v5065_v12 = vpop.permute.xlu0 %1733  ;;  %v5067_v16 = vpop.permute.xlu1 %1739 }
 0x32e   : > { %v5069_v14 = vpop.permute.xlu0 %1661  ;;  %v5071_v11 = vpop.permute.xlu1 %1667 }
 0x332   : > { %v5074_v22 = vpop.permute.xlu0 %1673  ;;  %v5077_v57 = vpop.permute.xlu1 %1679 }
 0x336   : > { %v5097_v10 = vpop.permute.xlu1 %1691 }
 0x340   : > { %v4082_v50 = vpop.f32.mrb[20].mxu1 }
 0x341   : > { %v1197_v4 = vsel %vm1195_vm2, %v4082_v50, -inf  ;;  %v956_v42 = vpop.f32.mrb[21].mxu1 }
 0x342   : > { %v1196_v54 = vsel %vm1195_vm2, %v956_v42, -inf  ;;  %v5079_v24 = vpop.f32.mrb[4].mxu0 }
 0x343   : > { %v1198_v62 = vmax.f32 %v1196_v54, %v1197_v4  ;;  %v1206_v35 = vsel %vm1195_vm2, %v5079_v24, -inf  ;;  %v1071_v38 = vpop.f32.mrb[5].mxu0  ;;  %v5090_v54 = vpop.permute.xlu0 %1685 }
 0x344   : > { %v1205_v26 = vsel %vm1195_vm2, %v1071_v38, -inf }
 0x345   : > { %v1199_v33 = vrot.slane %v1198_v62, 4  ;;  %v1207_v8 = vmax.f32 %v1205_v26, %v1206_v35  ;;  %v5804_v35 = vsub.f32 %v4888_v9, %v4803_v28  ;;  %v5122_v9 = vpop.permute.xlu1 %1705 }
 0x347   : > { %v1200_v6 = vmax.f32 %v1198_v62, %v1199_v33  ;;  %v1208_v4 = vrot.slane %v1207_v8, 4  ;;  %4408 = vtanh.f32 %v5804_v35  ;;  %v5120_v28 = vpop.permute.xlu0 %1697 }
 0x348   : > { %v5092_v20 = vpop.f32.mrb[22].mxu1  ;;  %4410 = vtanh.f32 %v5805_v3 }
 0x349   : > { %v1201_v26 = vrot.slane %v1200_v6, 2  ;;  %v1215_v7 = vsel %vm1195_vm2, %v5092_v20, -inf  ;;  %v1186_v25 = vpop.f32.mrb[23].mxu1  ;;  %v1209_v5 = vmax.f32 %v1207_v8, %v1208_v4  ;;  %4412 = vtanh.f32 %v5806_v48  ;;  %v4401_v48 = vpop.eup %4400 }
 0x34a   : > { %v1214_v33 = vsel %vm1195_vm2, %v1186_v25, -inf  ;;  %v5807_v8 = vsub.f32 %v4905_v55, %v4807_v32  ;;  %v5810_v55 = vsub.f32 %v4927_v59, %v4807_v32  ;;  %v5812_v32 = vsub.f32 %v4939_v15, %v4813_v39 }
 0x34b   : > { %v1202_v23 = vmax.f32 %v1200_v6, %v1201_v26  ;;  %v1216_v34 = vmax.f32 %v1214_v33, %v1215_v7  ;;  %v1210_v62 = vrot.slane %v1209_v5, 2  ;;  %v5808_v6 = vsub.f32 %v4913_v56, %v4809_v36  ;;  %v4403_v56 = vpop.eup %4402 }
 0x34c   : > { %4414 = vtanh.f32 %v5807_v8  ;;  %v5811_v33 = vsub.f32 %v4931_v60, %v4815_v40  ;;  %v5141_v60 = vpop.permute.xlu1 %1393 }
 0x34d   : > { %v1203_v41 = vrot.slane %v1202_v23, 1  ;;  %v1217_v30 = vrot.slane %v1216_v34, 4  ;;  %v1211_v4 = vmax.f32 %v1209_v5, %v1210_v62  ;;  %4416 = vtanh.f32 %v5808_v6 }
 0x34e   : > { %4418 = vtanh.f32 %v5809_v29 }
 0x34f   : > { %v1204_v49 = vmax.f32 %v1202_v23, %v1203_v41  ;;  %v1218_v26 = vmax.f32 %v1216_v34, %v1217_v30  ;;  %v1212_v53 = vrot.slane %v1211_v4, 1  ;;  %4420 = vtanh.f32 %v5810_v55  ;;  %v4405_v23 = vpop.eup %4404  ;;  %v5139_v30 = vpop.permute.xlu0 %1389 }
 0x350   : > { %4422 = vtanh.f32 %v5811_v33  ;;  %v4407_v41 = vpop.eup %4406 }
 0x351   : > { %v1223_v7 = vsub.f32 %v956_v42, %v1204_v49  ;;  %v1224_v5 = vsub.f32 %v4082_v50, %v1204_v49  ;;  %v1219_v36 = vrot.slane %v1218_v26, 2  ;;  %v1213_v35 = vmax.f32 %v1211_v4, %v1212_v53  ;;  %v4409_v42 = vpop.eup %4408 }
 0x352   : > { %4424 = vtanh.f32 %v5812_v32  ;;  %v4411_v1 = vpop.eup %4410 }
 0x353   : > { %v1229_v34 = vmul.f32 1.442695, %v1223_v7  ;;  %v1231_v3 = vmul.f32 1.442695, %v1224_v5  ;;  %v1220_v62 = vmax.f32 %v1218_v26, %v1219_v36  ;;  %v1225_v59 = vsub.f32 %v1071_v38, %v1213_v35  ;;  %v4413_v49 = vpop.eup %4412  ;;  %v5144_v55 = vpop.permute.xlu0 %1400 }
 0x354   : > { %v1226_v50 = vsub.f32 %v5079_v24, %v1213_v35  ;;  %v5146_v7 = vpop.permute.xlu1 %1404  ;;  %v5148_v35 = vstv %s374_s28 }
 0x355   : > { %4426 = vpow2.f32 %v1229_v34  ;;  %v1221_v8 = vrot.slane %v1220_v62, 1  ;;  %v1233_v4 = vmul.f32 1.442695, %v1225_v59  ;;  %v5163_v32 = vmul.f32 %v4403_v56, %v5148_v35 }
 0x356   : > { %4428 = vpow2.f32 %v1231_v3  ;;  %v1235_v6 = vmul.f32 1.442695, %v1226_v50  ;;  %v4415_v39 = vpop.eup %4414  ;;  %v1574_v50 = vsub.f32 %v5003_v2, %v4819_v44  ;;  %v5185_v44 = vmul.f32 %v4411_v1, %v5148_v35 }
 0x357   : > { %4430 = vtanh.f32 %v1575_v58  ;;  %v1222_v26 = vmax.f32 %v1220_v62, %v1221_v8  ;;  %v4417_v38 = vpop.eup %4416  ;;  %v5160_v62 = vmul.f32 %v4401_v48, %v5148_v35  ;;  %v5177_v48 = vmul.f32 %v4407_v41, %v5148_v35 }
 0x358   : > { %4432 = vpow2.f32 %v1233_v4  ;;  %v4419_v29 = vpop.eup %4418  ;;  %v5169_v4 = vpop.permute.xlu0 %1411  ;;  %v5188_v2 = vmul.f32 %v4415_v39, %v5148_v35  ;;  %v1881_v41 = vcombine.low %v4915_v61, %v5055_v17 }
 0x359   : > { %4434 = vpow2.f32 %v1235_v6  ;;  %v1227_v15 = vsub.f32 %v1186_v25, %v1222_v26  ;;  %v1228_v24 = vsub.f32 %v5092_v20, %v1222_v26  ;;  %v4421_v53 = vpop.eup %4420  ;;  %v5157_v25 = vmul.f32 %v4405_v23, %v5148_v35  ;;  %v5171_v6 = vpop.permute.xlu1 %1415 }
 0x35a   : > { %v4423_v33 = vpop.eup %4422  ;;  %v5174_v23 = vmul.f32 %v4409_v42, %v5148_v35  ;;  %5813 = vst [vmem:[#allocation15_spill] sm:$0xff] %v5188_v2  ;;  %v5814_v42 = vsub.f32 %v4949_v19, %v4815_v40 }
 0x35b   : > { %v1237_v5 = vmul.f32 1.442695, %v1227_v15  ;;  %v1239_v36 = vmul.f32 1.442695, %v1228_v24  ;;  %v5182_v15 = vmul.f32 %v4413_v49, %v5148_v35  ;;  %v5200_v49 = vmul.f32 %v4417_v38, %v5148_v35 }
 0x35c   : > { %v4425_v58 = vpop.eup %4424  ;;  %v1882_v38 = vcombine.high %v4915_v61, %v5055_v17  ;;  %v1423_v61 = vpop.permute.xlu0 %1422 }
 0x35d   : > { %4436 = vpow2.f32 %v1237_v5  ;;  %v5211_v19 = vmul.f32 %v4425_v58, %v5148_v35  ;;  %v1898_v58 = vcombine.high %v5035_v63, %v5057_v46  ;;  %v5232_v17 = vpop.permute.xlu1 %1426 }
 0x35e   : > { %4438 = vpow2.f32 %v1239_v36  ;;  %v5205_v36 = vmul.f32 %v4421_v53, %v5148_v35 }
 0x35f   : > { %v5150_v34 = vpop.eup %4426  ;;  %4440 = vtanh.f32 %v5814_v42  ;;  %5817 = vst [vmem:[#allocation18_spill] sm:$0xff] %v5211_v19  ;;  %v1897_v42 = vcombine.low %v5035_v63, %v5057_v46  ;;  %v1929_v63 = vcombine.low %v5063_v18, %v5067_v16  ;;  %v1578_v46 = vsub.f32 %v5144_v55, %v4821_v45 }
 0x360   : > { %v5152_v3 = vpop.eup %4428  ;;  %v1241_v20 = vsel %vm1195_vm2, %v5150_v34, 0.0  ;;  %5815 = vst [vmem:[#allocation16_spill] sm:$0xff] %v5205_v36  ;;  %4442 = vtanh.f32 %v1574_v50  ;;  %v5226_v50 = vrot.slane %v1881_v41, %v5006_v31  ;;  %v1580_v55 = vsub.f32 %v5169_v4, %v4817_v43 }
 0x361   : > { %v4431_v59 = vpop.eup %4430  ;;  %v1242_v8 = vsel %vm1195_vm2, %v5152_v3, 0.0 }
 0x362   : > { %v5179_v26 = vpop.eup %4432  ;;  %v1243_v56 = vadd.f32 %v1242_v8, %v1241_v20  ;;  %v5208_v20 = vmul.f32 %v4419_v29, %v5148_v35  ;;  %v5214_v8 = vmul.f32 %v4423_v33, %v5148_v35  ;;  %v5221_v53 = vmul.f32 %v4431_v59, %v5148_v35 }
 0x363   : > { %v5190_v24 = vpop.eup %4434  ;;  %v1250_v5 = vsel %vm1195_vm2, %v5179_v26, 0.0  ;;  %v1576_v33 = vsub.f32 %v5139_v30, %v4811_v37  ;;  %v1913_v59 = vcombine.low %v5061_v21, %v5065_v12 }
 0x364   : > { %v1244_v1 = vrot.slane %v1243_v56, 4  ;;  %v1251_v39 = vsel %vm1195_vm2, %v5190_v24, 0.0  ;;  %5816 = vst [vmem:[#allocation17_spill] sm:$0xff] %v5208_v20  ;;  %5818 = vst [vmem:[#allocation19_spill] sm:$0xff] %v5214_v8  ;;  %v1930_v20 = vcombine.high %v5063_v18, %v5067_v16  ;;  %v5262_v18 = vpop.permute.xlu1 %1717 }
 0x365   : > { %v1252_v40 = vadd.f32 %v1251_v39, %v1250_v5  ;;  %5819 = vst [vmem:[#allocation20_spill] sm:$0xff] %v5221_v53  ;;  %v1914_v53 = vcombine.high %v5061_v21, %v5065_v12  ;;  %4444 = vtanh.f32 %v1576_v33  ;;  %v5268_v33 = vrot.slane %v1882_v38, %v5006_v31 }
 0x366   : > { %v1245_v51 = vadd.f32 %v1244_v1, %v1243_v56  ;;  %v1577_v56 = vsub.f32 %v5141_v60, %v4811_v37  ;;  %v1579_v37 = vsub.f32 %v5146_v7, %v4821_v45  ;;  %v1581_v45 = vsub.f32 %v5171_v6, %v4817_v43 }
 0x367   : > { %v5223_v29 = vpop.eup %4436  ;;  %v1253_v5 = vrot.slane %v1252_v40, 4  ;;  %v1582_v7 = vsub.f32 %v1423_v61, %v4823_v47  ;;  %v5272_v43 = vrot.slane %v1898_v58, %v5006_v31  ;;  %v5275_v6 = vrot.slane %v1914_v53, %v5006_v31 }
 0x368   : > { %v5234_v39 = vpop.eup %4438  ;;  %v1246_v41 = vrot.slane %v1245_v51, 2  ;;  %v1259_v1 = vsel %vm1195_vm2, %v5223_v29, 0.0  ;;  %4446 = vtanh.f32 %v1577_v56  ;;  %v2041_v53 = vcombine.low %v5090_v54, %v5120_v28 }
 0x369   : > { %v1254_v30 = vadd.f32 %v1253_v5, %v1252_v40  ;;  %v1260_v52 = vsel %vm1195_vm2, %v5234_v39, 0.0  ;;  %v1921_v40 = vrot.slane %v1913_v59, %v5006_v31  ;;  %v4441_v36 = vpop.eup %4440  ;;  %4448 = vtanh.f32 %v1578_v46 }
 0x36a   : > { %v1247_v8 = vadd.f32 %v1246_v41, %v1245_v51  ;;  %v1261_v60 = vadd.f32 %v1260_v52, %v1259_v1  ;;  %v1937_v51 = vrot.slane %v1929_v63, %v5006_v31  ;;  %v5260_v52 = vpop.permute.xlu0 %1711  ;;  %4450 = vtanh.f32 %v1579_v37  ;;  %v4443_v4 = vpop.eup %4442 }
 0x36b   : > { %v1255_v19 = vrot.slane %v1254_v30, 2  ;;  %4452 = vtanh.f32 %v1580_v55  ;;  %v5290_v63 = vpop.permute.xlu1 %1729  ;;  %v5296_v37 = vmul.f32 %v4443_v4, %v5148_v35  ;;  %v2017_v28 = vcombine.low %v4958_v13, %v5071_v11 }
 0x36c   : > { %v1248_v5 = vrot.slane %v1247_v8, 1  ;;  %v1262_v2 = vrot.slane %v1261_v60, 4  ;;  %v1977_v61 = vcombine.low %v1921_v40, %v1937_v51  ;;  %v1978_v38 = vcombine.high %v1921_v40, %v1937_v51 }
 0x36d   : > { %v1256_v21 = vadd.f32 %v1255_v19, %v1254_v30  ;;  %v1905_v19 = vrot.slane %v1897_v42, %v5006_v31  ;;  %v5281_v42 = vmul.f32 %v4441_v36, %v5148_v35  ;;  %v1961_v36 = vcombine.low %v5268_v33, %v5272_v43 }
 0x36e   : > { %v1249_v12 = vadd.f32 %v1248_v5, %v1247_v8  ;;  %v1263_v16 = vadd.f32 %v1262_v2, %v1261_v60  ;;  %v5278_v2 = vrot.slane %v1930_v20, %v5006_v31  ;;  %v1583_v20 = vsub.f32 %v5232_v17, %v4823_v47  ;;  %v5288_v1 = vpop.permute.xlu0 %1723 }
 0x36f   : > { %v1257_v59 = vrot.slane %v1256_v21, 1  ;;  %v1945_v58 = vcombine.low %v5226_v50, %v1905_v19  ;;  %v1946_v46 = vcombine.high %v5226_v50, %v1905_v19  ;;  %v4445_v60 = vpop.eup %4444  ;;  %v5299_v54 = vrot.slane %v1977_v61, %v5015_v0 }
 0x370   : > { %4454 = vrcp.f32 %v1249_v12  ;;  %v1264_v8 = vrot.slane %v1263_v16, 2  ;;  %v1993_v47 = vcombine.low %v5275_v6, %v5278_v2  ;;  %v2033_v50 = vcombine.low %v5077_v57, %v5097_v10 }
 0x371   : > { %v1258_v56 = vadd.f32 %v1257_v59, %v1256_v21  ;;  %4456 = vtanh.f32 %v1581_v45  ;;  %v5308_v55 = vrot.slane %v1978_v38, %v5015_v0  ;;  %v2025_v40 = vcombine.low %v5069_v14, %v5074_v22 }
 0x372   : > { %v1265_v41 = vadd.f32 %v1264_v8, %v1263_v16  ;;  %4458 = vtanh.f32 %v1582_v7  ;;  %v4447_v17 = vpop.eup %4446  ;;  %v5313_v5 = vstv %s5264_s29  ;;  %v5316_v45 = vrot.slane %v1945_v58, %v5015_v0  ;;  %v1736_v59 = vpop.permute.xlu0 %1735 }
 0x373   : > { %4460 = vrcp.f32 %v1258_v56  ;;  %v4449_v21 = vpop.eup %4448  ;;  %v5321_v11 = vrot.slane %v2041_v53, %v5006_v31  ;;  %v5324_v57 = vrot.slane %v1946_v46, %v5015_v0  ;;  %v5327_v22 = vrot.slane %v1961_v36, %v5015_v0  ;;  %v1742_v8 = vpop.permute.xlu1 %1741 }
 0x374   : > { %v1266_v30 = vrot.slane %v1265_v41, 1  ;;  %4462 = vtanh.f32 %v1583_v20  ;;  %v4451_v10 = vpop.eup %4450  ;;  %v5332_v16 = vrot.slane %v1993_v47, %v5015_v0  ;;  %v5337_v4 = vrot.slane %v2017_v28, %v5006_v31 }
 0x375   : > { %v4453_v12 = vpop.eup %4452  ;;  %v5340_v19 = vrot.slane %v2033_v50, %v5006_v31  ;;  %v5349_v58 = vrot.slane %v2025_v40, %v5006_v31  ;;  %v2101_v50 = vcombine.low %v5288_v1, %v1736_v59  ;;  %v2109_v40 = vcombine.low %v5290_v63, %v1742_v8 }
 0x376   : > { %v1267_v51 = vadd.f32 %v1266_v30, %v1265_v41  ;;  %v5356_v30 = vmul.f32 %v4445_v60, %v5148_v35  ;;  %v5376_v63 = vmul.f32 %v4449_v21, %v5148_v35  ;;  %v5381_v13 = vmul.f32 %v4451_v10, %v5148_v35 }
 0x378   : > { %4464 = vrcp.f32 %v1267_v51  ;;  %v1284_v51 = vld [vmem:[%s5770_s6] sm:$0xff] }
 0x37a   : > { %v4455_v61 = vpop.eup %4454 }
 0x37b   : > { %v4457_v53 = vpop.eup %4456  ;;  %v1271_v46 = vmul.f32 %v4455_v61, %v5150_v34  ;;  %v1272_v36 = vmul.f32 %v4455_v61, %v5152_v3  ;;  %v1285_v34 = vld [vmem:[%s5770_s6 + $0x8] sm:$0xff]  ;;  %v5369_v3 = vmul.f32 %v4447_v17, %v5148_v35  ;;  %v5384_v17 = vmul.f32 %v4453_v12, %v5148_v35 }
 0x37c   : > { %v4459_v47 = vpop.eup %4458  ;;  %v5387_v14 = vmul.f32 %v4457_v53, %v5148_v35 }
 0x37d   : > { %v4461_v60 = vpop.eup %4460  ;;  %v1278_v61 = vmul.f32 %v5313_v5, %v1271_v46  ;;  %v1279_v1 = vmul.f32 %v5313_v5, %v1272_v36  ;;  %v5390_v36 = vmul.f32 %v4459_v47, %v5148_v35 }
 0x37e   : > { %v1273_v59 = vmul.f32 %v4461_v60, %v5179_v26  ;;  %v1274_v8 = vmul.f32 %v4461_v60, %v5190_v24  ;;  %v5394_v26 = vrot.slane %v2101_v50, %v5006_v31  ;;  %v5397_v24 = vrot.slane %v2109_v40, %v5006_v31  ;;  %v4463_v12 = vpop.eup %4462  ;;  %v1286_v60 = vld [vmem:[%s5770_s6 + $0x10] sm:$0xff]  ;;  %v1287_v50 = vld [vmem:[%s5770_s6 + $0x18] sm:$0xff] }
 0x37f   : > { %v1290_v41 = vadd.f32 %v1284_v51, %v1278_v61  ;;  %v1291_v46 = vadd.f32 %v1285_v34, %v1279_v1 }
 0x380   : > { %v1280_v21 = vmul.f32 %v5313_v5, %v1273_v59  ;;  %v1281_v10 = vmul.f32 %v5313_v5, %v1274_v8 }
 0x381   : > { %v1633_v51 = vadd.f32 %v5157_v25, %v1290_v41  ;;  %v1634_v34 = vadd.f32 %v5160_v62, %v1291_v46  ;;  %v1635_v53 = vadd.f32 %v5174_v23, %v1290_v41  ;;  %v1636_v47 = vadd.f32 %v5163_v32, %v1291_v46 }
 0x382   : > { %v4465_v40 = vpop.eup %4464  ;;  %v1637_v61 = vadd.f32 %v5182_v15, %v1290_v41  ;;  %v1638_v1 = vadd.f32 %v5177_v48, %v1291_v46  ;;  %v1639_v25 = vadd.f32 %v5200_v49, %v1290_v41  ;;  %v1640_v62 = vadd.f32 %v5185_v44, %v1291_v46  ;;  %v1288_v15 = vld [vmem:[%s5770_s6 + $0x20] sm:$0xff]  ;;  %v5820_v49 = vld [vmem:[#allocation16_spill] sm:$0xff]  ;;  %v5822_v46 = vld [vmem:[#allocation18_spill] sm:$0xff] }
 0x383   : > { %v1275_v23 = vmul.f32 %v4465_v40, %v5223_v29  ;;  %v1276_v32 = vmul.f32 %v4465_v40, %v5234_v39  ;;  %v4241_v59 = vpack.c.bf16 %v1634_v34, %v1633_v51  ;;  %v4245_v8 = vpack.c.bf16 %v1636_v47, %v1635_v53  ;;  %v5821_v39 = vld [vmem:[#allocation15_spill] sm:$0xff] }
 0x384   : > { %v4249_v38 = vpack.c.bf16 %v1638_v1, %v1637_v61  ;;  %v4253_v20 = vpack.c.bf16 %v1640_v62, %v1639_v25  ;;  %v1292_v28 = vadd.f32 %v1286_v60, %v1280_v21  ;;  %v1293_v56 = vadd.f32 %v1287_v50, %v1281_v10  ;;  %v1289_v10 = vld [vmem:[%s5770_s6 + $0x28] sm:$0xff]  ;;  %v5824_v53 = vld [vmem:[#allocation19_spill] sm:$0xff]  ;;  %v5825_v60 = vld [vmem:[#allocation20_spill] sm:$0xff] }
 0x385   : > { %v1282_v7 = vmul.f32 %v5313_v5, %v1275_v23  ;;  %4242 = vmatprep.subr.bf16.mxu0 %v4241_v59  ;;  %4246 = vmatprep.subr.bf16.mxu1 %v4245_v8  ;;  %v1283_v48 = vmul.f32 %v5313_v5, %v1276_v32  ;;  %v1632_v44 = vmul.f32 %v4463_v12, %v5148_v35  ;;  %v5823_v5 = vld [vmem:[#allocation17_spill] sm:$0xff]  ;;  %v5829_v32 = vld [vmem:[#allocation10_spill] sm:$0xff] }
 0x386   : > { %4244 = vmatpush3.bf16.msra.mxu0 %v4241_v59  ;;  %4248 = vmatpush3.bf16.msra.mxu1 %v4245_v8  ;;  %v1641_v29 = vadd.f32 %v5820_v49, %v1292_v28  ;;  %v1642_v41 = vadd.f32 %v5821_v39, %v1293_v56  ;;  %v1643_v21 = vadd.f32 %v5822_v46, %v1292_v28  ;;  %v5828_v23 = vld [vmem:[#allocation9_spill] sm:$0xff] }
 0x387   : > { %4250 = vmatprep.subr.bf16.mxu0 %v4249_v38  ;;  %4254 = vmatprep.subr.bf16.mxu1 %v4253_v20  ;;  %v1644_v51 = vadd.f32 %v5823_v5, %v1293_v56  ;;  %v1645_v34 = vadd.f32 %v5281_v42, %v1292_v28  ;;  %v1646_v35 = vadd.f32 %v5824_v53, %v1293_v56  ;;  %v5837_v39 = vld [vmem:[#allocation13_spill] sm:$0xff] }
 0x388   : > { %v4257_v12 = vpack.c.bf16 %v1642_v41, %v1641_v29  ;;  %v1647_v47 = vadd.f32 %v5296_v37, %v1292_v28  ;;  %v1648_v50 = vadd.f32 %v5825_v60, %v1293_v56  ;;  %v1294_v40 = vadd.f32 %v1288_v15, %v1282_v7 }
 0x389   : > { %v5826_v61 = vcombine.low %v5316_v45, %v5299_v54  ;;  %v5827_v1 = vcombine.high %v5316_v45, %v5299_v54  ;;  %v4261_v25 = vpack.c.bf16 %v1644_v51, %v1643_v21  ;;  %v4265_v42 = vpack.c.bf16 %v1646_v35, %v1645_v34 }
 0x38a   : > { %v1295_v62 = vadd.f32 %v1289_v10, %v1283_v48  ;;  %v5830_v37 = vcombine.low %v5828_v23, %v5829_v32  ;;  %v4269_v7 = vpack.c.bf16 %v1648_v50, %v1647_v47  ;;  %v1649_v56 = vadd.f32 %v5356_v30, %v1294_v40 }
 0x38b   : > { %4098 = vmatmul.mubr.msk.f32.vlgmr.msra.gmra.mrb[6].mxu0 %vm1195_vm2, %v5826_v61  ;;  %4105 = vmatmul.mubr.msk.f32.vlgmr.msra.gmra.mrb[24].mxu1 %vm1195_vm2, %v5827_v1  ;;  %v1651_v28 = vadd.f32 %v5376_v63, %v1294_v40  ;;  %v5831_v54 = vcombine.high %v5828_v23, %v5829_v32  ;;  %v1653_v59 = vadd.f32 %v5384_v17, %v1294_v40  ;;  %v5847_v32 = vmov 0.0  }
 0x38c   : > { %4252 = vmatpush3.bf16.msra.mxu0 %v4249_v38  ;;  %4111 = vmatprep.mubr.msk.f32.mxu0 %vm1195_vm2, %v5830_v37  ;;  %v1650_v45 = vadd.f32 %v5369_v3, %v1295_v62  ;;  %v1652_v38 = vadd.f32 %v5381_v13, %v1295_v62  ;;  %v1654_v8 = vadd.f32 %v5387_v14, %v1295_v62 }
 0x38d   : > { %4256 = vmatpush3.bf16.msra.mxu1 %v4253_v20  ;;  %4118 = vmatprep.mubr.msk.f32.mxu1 %vm1195_vm2, %v5831_v54  ;;  %v1655_v30 = vadd.f32 %v5390_v36, %v1294_v40  ;;  %v1656_v48 = vadd.f32 %v1632_v44, %v1295_v62  ;;  %v5832_v20 = vcombine.low %v4975_v27, %v5260_v52 }
 0x38e   : > { %4258 = vmatprep.subr.bf16.mxu0 %v4257_v12  ;;  %4262 = vmatprep.subr.bf16.mxu1 %v4261_v25  ;;  %v5833_v3 = vcombine.low %v5122_v9, %v5262_v18  ;;  %v5834_v13 = vcombine.low %v5324_v57, %v5308_v55  ;;  %v4273_v17 = vpack.c.bf16 %v1650_v45, %v1649_v56 }
 0x38f   : > { %v2092_v63 = vrot.slane %v5832_v20, %v5006_v31  ;;  %v4277_v14 = vpack.c.bf16 %v1652_v38, %v1651_v28  ;;  %v5835_v36 = vcombine.high %v5275_v6, %v5278_v2  ;;  %v5836_v27 = vcombine.high %v5324_v57, %v5308_v55  ;;  %v5838_v6 = vld [vmem:[#allocation11_spill] sm:$0xff] }
 0x390   : > { %v2100_v15 = vrot.slane %v5833_v3, %v5006_v31  ;;  %4112 = vmatmul.mubr.msk.f32.vlgmr.msra.gmra.mrb[8].mxu0 %vm1195_vm2, %v5834_v13  ;;  %v4281_v9 = vpack.c.bf16 %v1654_v8, %v1653_v59  ;;  %v4285_v52 = vpack.c.bf16 %v1656_v48, %v1655_v30  ;;  %v2013_v18 = vcombine.low %v5327_v22, %v5332_v16 }
 0x391   : > { %v2008_v44 = vrot.slane %v5835_v36, %v5015_v0  ;;  %4119 = vmatmul.mubr.msk.f32.vlgmr.msra.gmra.mrb[26].mxu1 %vm1195_vm2, %v5836_v27  ;;  %4260 = vmatpush3.bf16.msra.mxu0 %v4257_v12  ;;  %v2049_v49 = vcombine.low %v5337_v4, %v5349_v58  ;;  %v2133_v29 = vcombine.low %v5394_v26, %v5397_v24 }
 0x392   : > { %v5839_v2 = vcombine.low %v5837_v39, %v5838_v6  ;;  %4264 = vmatpush3.bf16.msra.mxu1 %v4261_v25  ;;  %v5840_v55 = vcombine.high %v5268_v33, %v5272_v43  ;;  %v2014_v41 = vcombine.high %v5327_v22, %v5332_v16  ;;  %v2066_v46 = vcombine.high %v5340_v19, %v5321_v11 }
 0x393   : > { %v5841_v21 = vcombine.high %v5837_v39, %v5838_v6  ;;  %4266 = vmatprep.subr.bf16.mxu0 %v4265_v42  ;;  %v5842_v10 = vcombine.low %v5340_v19, %v5321_v11  ;;  %v2117_v51 = vcombine.low %v2092_v63, %v2100_v15  ;;  %4270 = vmatprep.subr.bf16.mxu1 %v4269_v7  ;;  %v5843_v11 = vld [vmem:[#allocation14_spill] sm:$0xff]  ;;  %v5844_v19 = vld [vmem:[#allocation12_spill] sm:$0xff] }
 0x394   : > { %4125 = vmatprep.mubr.msk.f32.mxu0 %vm1195_vm2, %v5839_v2  ;;  %v1976_v57 = vrot.slane %v5840_v55, %v5015_v0  ;;  %v2050_v43 = vcombine.high %v5337_v4, %v5349_v58  ;;  %v2057_v22 = vrot.slane %v2049_v49, %v5015_v0  ;;  %v2134_v16 = vcombine.high %v5394_v26, %v5397_v24 }
 0x395   : > { %4132 = vmatprep.mubr.msk.f32.mxu1 %vm1195_vm2, %v5841_v21  ;;  %v2073_v5 = vrot.slane %v5842_v10, %v5015_v0  ;;  %4126 = vmatmul.mubr.msk.f32.vlgmr.msra.gmra.mrb[10].mxu0 %vm1195_vm2, %v2013_v18  ;;  %v2141_v34 = vrot.slane %v2133_v29, %v5015_v0  ;;  %v5845_v53 = vcombine.low %v5843_v11, %v5844_v19 }
 0x396   : > { %v2015_v33 = vcombine.low %v1976_v57, %v2008_v44  ;;  %4133 = vmatmul.mubr.msk.f32.vlgmr.msra.gmra.mrb[28].mxu1 %vm1195_vm2, %v2014_v41  ;;  %4268 = vmatpush3.bf16.msra.mxu0 %v4265_v42  ;;  %v2016_v35 = vcombine.high %v1976_v57, %v2008_v44  ;;  %v2080_v12 = vrot.slane %v2066_v46, %v5015_v0 }
 0x397   : > { %4139 = vmatprep.mubr.msk.f32.mxu0 %vm1195_vm2, %v5845_v53  ;;  %4272 = vmatpush3.bf16.msra.mxu1 %v4269_v7  ;;  %v5846_v4 = vcombine.high %v5843_v11, %v5844_v19  ;;  %v2118_v58 = vcombine.high %v2092_v63, %v2100_v15  ;;  %v2125_v26 = vrot.slane %v2117_v51, %v5015_v0 }
 0x398   : > { %4274 = vmatprep.subr.bf16.mxu0 %v4273_v17  ;;  %4278 = vmatprep.subr.bf16.mxu1 %v4277_v14  ;;  %v2081_v24 = vcombine.low %v2057_v22, %v2073_v5  ;;  %v2082_v47 = vcombine.high %v2057_v22, %v2073_v5  ;;  %v2064_v60 = vrot.slane %v2050_v43, %v5015_v0 }
 0x399   : > { %4146 = vmatprep.mubr.msk.f32.mxu1 %vm1195_vm2, %v5846_v4  ;;  %4140 = vmatmul.mubr.msk.f32.vlgmr.msra.gmra.mrb[12].mxu0 %vm1195_vm2, %v2015_v33  ;;  %v2148_v50 = vrot.slane %v2134_v16, %v5015_v0  ;;  %v2149_v40 = vcombine.low %v2125_v26, %v2141_v34  ;;  %v2150_v61 = vcombine.high %v2125_v26, %v2141_v34 }
 0x39a   : > { %4147 = vmatmul.mubr.msk.f32.vlgmr.msra.gmra.mrb[30].mxu1 %vm1195_vm2, %v2016_v35  ;;  %4276 = vmatpush3.bf16.msra.mxu0 %v4273_v17  ;;  %v2132_v1 = vrot.slane %v2118_v58, %v5015_v0  ;;  %v2083_v25 = vcombine.low %v2064_v60, %v2080_v12  ;;  %v2084_v42 = vcombine.high %v2064_v60, %v2080_v12 }
 0x39b   : > { %4153 = vmatprep.mubr.msk.f32.mxu0 %vm1195_vm2, %v2081_v24  ;;  %4280 = vmatpush3.bf16.msra.mxu1 %v4277_v14 }
 0x39c   : > { %4160 = vmatprep.mubr.msk.f32.mxu1 %vm1195_vm2, %v2082_v47  ;;  %4282 = vmatprep.subr.bf16.mxu0 %v4281_v9  ;;  %v2151_v62 = vcombine.low %v2132_v1, %v2148_v50  ;;  %v2152_v23 = vcombine.high %v2132_v1, %v2148_v50 }
 0x39d   : > { %4286 = vmatprep.subr.bf16.mxu1 %v4285_v52  ;;  %4154 = vmatmul.mubr.msk.f32.vlgmr.msra.gmra.mrb[14].mxu0 %vm1195_vm2, %v2149_v40 }
 0x39e   : > { %4161 = vmatmul.mubr.msk.f32.vlgmr.msra.gmra.mrb[32].mxu1 %vm1195_vm2, %v2150_v61  ;;  %4284 = vmatpush3.bf16.msra.mxu0 %v4281_v9 }
 0x39f   : > { %4167 = vmatprep.mubr.msk.f32.mxu0 %vm1195_vm2, %v2083_v25  ;;  %4288 = vmatpush3.bf16.msra.mxu1 %v4285_v52 }
 0x3a0   : > { %4174 = vmatprep.mubr.msk.f32.mxu1 %vm1195_vm2, %v2084_v42 }
 0x3a1   : > { %4168 = vmatmul.mubr.msk.f32.vlgmr.msra.gmra.mrb[16].mxu0 %vm1195_vm2, %v2151_v62 }
 0x3a2   : > { %4175 = vmatmul.mubr.msk.f32.vlgmr.msra.gmra.mrb[34].mxu1 %vm1195_vm2, %v2152_v23  ;;  %3758 = vmatprep.mubr.f32.mxu0 %v5847_v32 }
 0x45e   : > { %v4099_v37 = vpop.f32.mrb[6].mxu0  ;;  %v4106_v7 = vpop.f32.mrb[24].mxu1 }
 0x45f   : > { %v2225_v56 = vpop.f32.mrb[7].mxu0  ;;  %v2306_v28 = vpop.f32.mrb[25].mxu1 }
 0x463   : > { %v4113_v54 = vpop.f32.mrb[8].mxu0 }
 0x464   : > { %v3329_v45 = vcombine.low %v4099_v37, %v4113_v54  ;;  %v3330_v38 = vcombine.high %v4099_v37, %v4113_v54  ;;  %v4120_v59 = vpop.f32.mrb[26].mxu1  ;;  %v2387_v8 = vpop.f32.mrb[9].mxu0 }
 0x465   : > { %v3345_v30 = vcombine.low %v4106_v7, %v4120_v59  ;;  %v3346_v48 = vcombine.high %v4106_v7, %v4120_v59  ;;  %v3125_v20 = vcombine.low %v2225_v56, %v2387_v8  ;;  %v3126_v63 = vcombine.high %v2225_v56, %v2387_v8  ;;  %v2468_v3 = vpop.f32.mrb[27].mxu1 }
 0x466   : > { %v3337_v15 = vrot.slane %v3329_v45, %v5006_v31  ;;  %v3344_v13 = vrot.slane %v3330_v38, %v5006_v31  ;;  %v3141_v17 = vcombine.low %v2306_v28, %v2468_v3  ;;  %v3142_v14 = vcombine.high %v2306_v28, %v2468_v3 }
 0x467   : > { %v3353_v36 = vrot.slane %v3345_v30, %v5006_v31  ;;  %v3360_v44 = vrot.slane %v3346_v48, %v5006_v31  ;;  %v3133_v27 = vrot.slane %v3125_v20, %v5006_v31  ;;  %v5540_v9 = vrot.slane %v3126_v63, %v5006_v31 }
 0x468   : > { %v4127_v52 = vpop.f32.mrb[10].mxu0  ;;  %v3149_v18 = vrot.slane %v3141_v17, %v5006_v31  ;;  %v5544_v49 = vrot.slane %v3142_v14, %v5006_v31 }
 0x469   : > { %v4134_v29 = vpop.f32.mrb[28].mxu1  ;;  %v2549_v39 = vpop.f32.mrb[11].mxu0  ;;  %v3393_v6 = vcombine.low %v3337_v15, %v3353_v36  ;;  %v3394_v2 = vcombine.high %v3337_v15, %v3353_v36  ;;  %v3409_v55 = vcombine.low %v3344_v13, %v3360_v44  ;;  %v3410_v57 = vcombine.high %v3344_v13, %v3360_v44 }
 0x46a   : > { %v2630_v41 = vpop.f32.mrb[29].mxu1  ;;  %v3189_v46 = vcombine.low %v3133_v27, %v3149_v18  ;;  %v3190_v21 = vcombine.high %v3133_v27, %v3149_v18  ;;  %v3205_v10 = vcombine.low %v5540_v9, %v5544_v49  ;;  %v3206_v5 = vcombine.high %v5540_v9, %v5544_v49 }
 0x46b   : > { %v5551_v51 = vrot.slane %v3393_v6, %v5015_v0  ;;  %v5554_v33 = vrot.slane %v3394_v2, %v5015_v0  ;;  %v5557_v22 = vrot.slane %v3409_v55, %v5015_v0  ;;  %v5560_v16 = vrot.slane %v3410_v57, %v5015_v0 }
 0x46c   : > { %v4141_v43 = vpop.f32.mrb[12].mxu0  ;;  %v5563_v34 = vrot.slane %v3189_v46, %v5015_v0  ;;  %v5566_v11 = vrot.slane %v3190_v21, %v5015_v0  ;;  %v5577_v3 = vrot.slane %v3205_v10, %v5015_v0 }
 0x46d   : > { %v4148_v19 = vpop.f32.mrb[30].mxu1  ;;  %v2711_v53 = vpop.f32.mrb[13].mxu0  ;;  %v3361_v35 = vcombine.low %v4127_v52, %v4141_v43  ;;  %v3362_v12 = vcombine.high %v4127_v52, %v4141_v43 }
 0x46e   : > { %v3377_v4 = vcombine.low %v4134_v29, %v4148_v19  ;;  %v3378_v58 = vcombine.high %v4134_v29, %v4148_v19  ;;  %v2792_v26 = vpop.f32.mrb[31].mxu1  ;;  %v3157_v24 = vcombine.low %v2549_v39, %v2711_v53  ;;  %v3158_v47 = vcombine.high %v2549_v39, %v2711_v53 }
 0x46f   : > { %v3173_v60 = vcombine.low %v2630_v41, %v2792_v26  ;;  %v3174_v50 = vcombine.high %v2630_v41, %v2792_v26  ;;  %v3369_v40 = vrot.slane %v3361_v35, %v5006_v31  ;;  %v3376_v61 = vrot.slane %v3362_v12, %v5006_v31 }
 0x470   : > { %v3385_v1 = vrot.slane %v3377_v4, %v5006_v31  ;;  %v3392_v25 = vrot.slane %v3378_v58, %v5006_v31  ;;  %v4155_v42 = vpop.f32.mrb[14].mxu0  ;;  %v3165_v62 = vrot.slane %v3157_v24, %v5006_v31  ;;  %v3172_v23 = vrot.slane %v3158_v47, %v5006_v31 }
 0x471   : > { %v3181_v37 = vrot.slane %v3173_v60, %v5006_v31  ;;  %v3188_v7 = vrot.slane %v3174_v50, %v5006_v31  ;;  %v4162_v56 = vpop.f32.mrb[32].mxu1  ;;  %v2873_v28 = vpop.f32.mrb[15].mxu0 }
 0x472   : > { %v3425_v54 = vcombine.low %v3369_v40, %v3385_v1  ;;  %v3426_v45 = vcombine.high %v3369_v40, %v3385_v1  ;;  %v3441_v38 = vcombine.low %v3376_v61, %v3392_v25  ;;  %v3442_v59 = vcombine.high %v3376_v61, %v3392_v25  ;;  %v2954_v8 = vpop.f32.mrb[33].mxu1 }
 0x473   : > { %v3221_v30 = vcombine.low %v3165_v62, %v3181_v37  ;;  %v3222_v48 = vcombine.high %v3165_v62, %v3181_v37  ;;  %v3237_v20 = vcombine.low %v3172_v23, %v3188_v7  ;;  %v3238_v63 = vcombine.high %v3172_v23, %v3188_v7 }
 0x474   : > { %v5580_v15 = vrot.slane %v3425_v54, %v5015_v0  ;;  %v5583_v13 = vrot.slane %v3426_v45, %v5015_v0  ;;  %v5586_v17 = vrot.slane %v3441_v38, %v5015_v0  ;;  %v4169_v14 = vpop.f32.mrb[16].mxu0  ;;  %v5589_v36 = vrot.slane %v3442_v59, %v5015_v0 }
 0x475   : > { %v5592_v44 = vrot.slane %v3221_v30, %v5015_v0  ;;  %v5595_v27 = vrot.slane %v3222_v48, %v5015_v0  ;;  %v5598_v52 = vrot.slane %v3237_v20, %v5015_v0  ;;  %v4176_v18 = vpop.f32.mrb[34].mxu1  ;;  %v3035_v29 = vpop.f32.mrb[17].mxu0  ;;  %v3465_v6 = vcombine.low %v4155_v42, %v4169_v14 }
 0x476   : > { %v3457_v39 = vcombine.low %v5551_v51, %v5580_v15  ;;  %v3466_v2 = vcombine.high %v4155_v42, %v4169_v14  ;;  %v3481_v55 = vcombine.low %v4162_v56, %v4176_v18  ;;  %v3116_v57 = vpop.f32.mrb[35].mxu1  ;;  %v3482_v46 = vcombine.high %v4162_v56, %v4176_v18 }
 0x477   : > { %v3253_v41 = vcombine.low %v5563_v34, %v5592_v44  ;;  %v3261_v21 = vcombine.low %v2873_v28, %v3035_v29  ;;  %v3262_v10 = vcombine.high %v2873_v28, %v3035_v29  ;;  %v3473_v43 = vrot.slane %v3465_v6, %v5006_v31 }
 0x478   : > { %v3480_v19 = vrot.slane %v3466_v2, %v5006_v31  ;;  %v3489_v53 = vrot.slane %v3481_v55, %v5006_v31  ;;  %v3277_v35 = vcombine.low %v2954_v8, %v3116_v57  ;;  %v3496_v12 = vrot.slane %v3482_v46, %v5006_v31 }
 0x479   : > { %v3269_v4 = vrot.slane %v3261_v21, %v5006_v31  ;;  %v3276_v58 = vrot.slane %v3262_v10, %v5006_v31  ;;  %v3278_v26 = vcombine.high %v2954_v8, %v3116_v57  ;;  %v3459_v50 = vcombine.low %v5554_v33, %v5583_v13 }
 0x47a   : > { %v3497_v24 = vcombine.low %v3473_v43, %v3489_v53  ;;  %v3498_v47 = vcombine.high %v3473_v43, %v3489_v53  ;;  %v3285_v60 = vrot.slane %v3277_v35, %v5006_v31  ;;  %v3513_v40 = vcombine.low %v3480_v19, %v3496_v12 }
 0x47b   : > { %v3514_v61 = vcombine.high %v3480_v19, %v3496_v12  ;;  %v3292_v1 = vrot.slane %v3278_v26, %v5006_v31  ;;  %v3255_v25 = vcombine.low %v5566_v11, %v5595_v27  ;;  %v3252_v42 = vrot.slane %v3238_v63, %v5015_v0  ;;  %v530_v26 = vld [vmem:[%s5767_s3] sm:$0xff] }
 0x47c   : > { %v3293_v62 = vcombine.low %v3269_v4, %v3285_v60  ;;  %v3294_v23 = vcombine.high %v3269_v4, %v3285_v60  ;;  %v3512_v37 = vrot.slane %v3498_v47, %v5015_v0  ;;  %v3461_v28 = vcombine.low %v5557_v22, %v5586_v17  ;;  %v3771_v47 = vld [vmem:[%s5772_s8] sm:$0xff]  ;;  %v3772_v60 = vld [vmem:[%s5772_s8 + $0x8] sm:$0xff] }
 0x47d   : > { %v3309_v7 = vcombine.low %v3276_v58, %v3292_v1  ;;  %v3310_v56 = vcombine.high %v3276_v58, %v3292_v1  ;;  %v3521_v54 = vrot.slane %v3513_v40, %v5015_v0  ;;  %v3220_v31 = vrot.slane %v3206_v5, %v5015_v0  ;;  %v595_v40 = vld [vmem:[%s5768_s4 + $0x8] sm:$0xff] }
 0x47e   : > { %v4329_v45 = vpack.i.bf16 %v3512_v37, %v3459_v50  ;;  %v3308_v38 = vrot.slane %v3294_v23, %v5015_v0  ;;  %v3257_v59 = vcombine.low %v5577_v3, %v5598_v52  ;;  %v3463_v48 = vcombine.low %v5560_v16, %v5589_v36  ;;  %v594_v50 = vld [vmem:[%s5768_s4] sm:$0xff]  ;;  %v3788_v1 = vld [vmem:[%s5773_s9 + $0x8] sm:$0xff] }
 0x47f   : > { %v4334_v8 = vpack.i.bf16 %v3521_v54, %v3461_v28  ;;  %v3317_v30 = vrot.slane %v3309_v7, %v5015_v0  ;;  %v3528_v20 = vrot.slane %v3514_v61, %v5015_v0  ;;  %v3259_v14 = vcombine.low %v3220_v31, %v3252_v42  ;;  %v3787_v61 = vld [vmem:[%s5773_s9] sm:$0xff] }
 0x480   : > { %4330 = vrot.lane.b32.xlu0 %v4329_v45, %s4501_s25  ;;  %v4344_v63 = vpack.i.bf16 %v3308_v38, %v3255_v25  ;;  %v3324_v9 = vrot.slane %v3310_v56, %v5015_v0  ;;  %v3458_v49 = vcombine.high %v5551_v51, %v5580_v15  ;;  %v3254_v29 = vcombine.high %v5563_v34, %v5592_v44 }
 0x481   : > { %v4349_v5 = vpack.i.bf16 %v3317_v30, %v3257_v59  ;;  %v4339_v18 = vpack.i.bf16 %v3528_v20, %v3463_v48  ;;  %v5639_v6 = vrot.slane %v3497_v24, %v5015_v0  ;;  %v3460_v55 = vcombine.high %v5554_v33, %v5583_v13  ;;  %v531_v24 = vld [vmem:[%s5767_s3 + $0x8] sm:$0xff] }
 0x482   : > { %4345 = vrot.lane.b32.xlu1 %v4344_v63, %s4501_s25  ;;  %v4354_v2 = vpack.i.bf16 %v3324_v9, %v3259_v14  ;;  %v3530_v57 = vcombine.high %v3512_v37, %v5847_v32  ;;  %v3256_v46 = vcombine.high %v5566_v11, %v5595_v27  ;;  %v3326_v21 = vcombine.high %v3308_v38, %v5847_v32 }
 0x483   : > { %v3462_v10 = vcombine.high %v5557_v22, %v5586_v17  ;;  %v5651_v43 = vrot.slane %v3293_v62, %v5015_v0  ;;  %v3531_v53 = vcombine.high %v3521_v54, %v5847_v32  ;;  %v3258_v33 = vcombine.high %v5577_v3, %v5598_v52 }
 0x484   : > { %4335 = vrot.lane.b32.xlu0 %v4334_v8, %s4499_s23  ;;  %v4364_v19 = vpack.i.bf16 %v3530_v57, %v3460_v55  ;;  %v4384_v13 = vpack.i.bf16 %v3326_v21, %v3256_v46  ;;  %v3327_v35 = vcombine.high %v3317_v30, %v5847_v32  ;;  %v3464_v11 = vcombine.high %v5560_v16, %v5589_v36 }
 0x485   : > { %v3532_v27 = vcombine.high %v3528_v20, %v5847_v32  ;;  %v3529_v0 = vcombine.high %v5639_v6, %v5847_v32  ;;  %v4369_v22 = vpack.i.bf16 %v3531_v53, %v3462_v10  ;;  %v3260_v17 = vcombine.high %v3220_v31, %v3252_v42 }
 0x486   : > { %4350 = vrot.lane.b32.xlu1 %v4349_v5, %s4499_s23  ;;  %v3328_v12 = vcombine.high %v3324_v9, %v5847_v32  ;;  %v4389_v4 = vpack.i.bf16 %v3327_v35, %v3258_v33  ;;  %v3325_v3 = vcombine.high %v5651_v43, %v5847_v32 }
 0x487   : > { %v4374_v58 = vpack.i.bf16 %v3532_v27, %v3464_v11  ;;  %v4359_v16 = vpack.i.bf16 %v3529_v0, %v3458_v49 }
 0x488   : > { %4340 = vrot.lane.b32.xlu0 %v4339_v18, %s4497_s21  ;;  %v4394_v52 = vpack.i.bf16 %v3328_v12, %v3260_v17  ;;  %v4379_v36 = vpack.i.bf16 %v3325_v3, %v3254_v29 }
 0x48a   : > { %4355 = vrot.lane.b32.xlu1 %v4354_v2, %s4497_s21  ;;  %s3944_s21 = sshll.u32 %s5853_s14, 5 }
 0x48b   : > { %s373_s12 = scalar_lea.vmem %s5774_s10, %s3944_s21 }
 0x48c   : > { %4360 = vrot.lane.b32.xlu0 %v4359_v16, %s4503_s27 }
 0x48e   : > { %4380 = vrot.lane.b32.xlu1 %v4379_v36, %s4503_s27 }
 0x490   : > { %4365 = vrot.lane.b32.xlu0 %v4364_v19, %s4502_s26 }
 0x492   : > { %4385 = vrot.lane.b32.xlu1 %v4384_v13, %s4502_s26 }
 0x494   : > { %4370 = vrot.lane.b32.xlu0 %v4369_v22, %s4500_s24 }
 0x496   : > { %4390 = vrot.lane.b32.xlu1 %v4389_v4, %s4500_s24 }
 0x498   : > { %4375 = vrot.lane.b32.xlu0 %v4374_v58, %s4498_s22 }
 0x49a   : > { %4395 = vrot.lane.b32.xlu1 %v4394_v52, %s4498_s22 }
 0x49c   : > { %540 = vperm.xlu0 %4327, %v530_v26  }
 0x49e   : > { %545 = vperm.xlu1 %4328, %v531_v24  }
 0x4a0   : > { %3775 = vperm.xlu0 %4327, %v3771_v47  }
 0x4a2   : > { %3780 = vperm.xlu1 %4328, %v3772_v60  }
 0x4a4   : > { %604 = vperm.xlu0 %4327, %v594_v50  }
 0x4a6   : > { %609 = vperm.xlu1 %4328, %v595_v40  }
 0x4a8   : > { %3791 = vperm.xlu0 %4327, %v3787_v61  }
 0x4aa   : > { %3796 = vperm.xlu1 %4328, %v3788_v1  }
 0x4f2   : > { %v4331_v25 = vpop.permute.xlu0 %4330 }
 0x4f3   : > { %v4333_v30 = vunpack.i.h.bf16 %v4331_v25  ;;  %v4332_v48 = vunpack.i.l.bf16 %v4331_v25 }
 0x4f4   : > { %v4346_v42 = vpop.permute.xlu1 %4345 }
 0x4f5   : > { %v4348_v51 = vunpack.i.h.bf16 %v4346_v42  ;;  %v4347_v15 = vunpack.i.l.bf16 %v4346_v42 }
 0x4f6   : > { %v4336_v62 = vpop.permute.xlu0 %4335 }
 0x4f7   : > { %v4338_v57 = vunpack.i.h.bf16 %v4336_v62  ;;  %v4337_v46 = vunpack.i.l.bf16 %v4336_v62 }
 0x4f8   : > { %v4351_v23 = vpop.permute.xlu1 %4350 }
 0x4f9   : > { %v4353_v53 = vunpack.i.h.bf16 %v4351_v23  ;;  %v4352_v33 = vunpack.i.l.bf16 %v4351_v23 }
 0x4fa   : > { %v5701_v37 = vpop.permute.xlu0 %4340 }
 0x4fb   : > { %v4343_v12 = vunpack.i.h.bf16 %v5701_v37  ;;  %v4342_v4 = vunpack.i.l.bf16 %v5701_v37 }
 0x4fc   : > { %v5703_v7 = vpop.permute.xlu1 %4355 }
 0x4fd   : > { %v4358_v47 = vunpack.i.h.bf16 %v5703_v7  ;;  %v4357_v60 = vunpack.i.l.bf16 %v5703_v7 }
 0x4fe   : > { %v4361_v56 = vpop.permute.xlu0 %4360 }
 0x4ff   : > { %v4363_v28 = vunpack.i.h.bf16 %v4361_v56  ;;  %v4362_v54 = vunpack.i.l.bf16 %v4361_v56 }
 0x500   : > { %v4381_v31 = vpop.permute.xlu1 %4380 }
 0x501   : > { %v3666_v45 = vsel %vm1195_vm2, %v5639_v6, %v4363_v28  ;;  %v3665_v38 = vsel %vm1195_vm2, %v3457_v39, %v4362_v54  ;;  %v4383_v59 = vunpack.i.h.bf16 %v4381_v31  ;;  %v4382_v8 = vunpack.i.l.bf16 %v4381_v31  ;;  %v3679_v31 = vld [vmem:[%s5771_s7] sm:$0xff] }
 0x502   : > { %v4366_v20 = vpop.permute.xlu0 %4365  ;;  %v3667_v39 = vsel %vm3647_vm3, %v3665_v38, %v4332_v48  ;;  %v3668_v5 = vsel %vm3647_vm3, %v3666_v45, %v4333_v30  ;;  %v3680_v45 = vld [vmem:[%s5771_s7 + $0x8] sm:$0xff] }
 0x503   : > { %v3646_v63 = vsel %vm1195_vm2, %v5651_v43, %v4383_v59  ;;  %v3645_v14 = vsel %vm1195_vm2, %v3253_v41, %v4382_v8  ;;  %v4368_v9 = vunpack.i.h.bf16 %v4366_v20  ;;  %v4367_v49 = vunpack.i.l.bf16 %v4366_v20 }
 0x504   : > { %v4386_v18 = vpop.permute.xlu1 %4385  ;;  %v3648_v34 = vsel %vm3647_vm3, %v3645_v14, %v4347_v15  ;;  %v3649_v44 = vsel %vm3647_vm3, %v3646_v63, %v4348_v51  ;;  %v5848_v14 = vld [vmem:[#allocation5_spill] sm:$0xff]  ;;  %v5849_v15 = vld [vmem:[#allocation6_spill] sm:$0xff] }
 0x505   : > { %v3669_v29 = vsel %vm3650_vm4, %v3667_v39, %v4367_v49  ;;  %v3670_v6 = vsel %vm3650_vm4, %v3668_v5, %v4368_v9  ;;  %v4388_v2 = vunpack.i.h.bf16 %v4386_v18  ;;  %v4387_v55 = vunpack.i.l.bf16 %v4386_v18 }
 0x506   : > { %v4371_v41 = vpop.permute.xlu0 %4370  ;;  %v3671_v13 = vsel %vm3653_vm5, %v3669_v29, %v4337_v46  ;;  %v3672_v35 = vsel %vm3653_vm5, %v3670_v6, %v4338_v57  ;;  %v5850_v57 = vld [vmem:[#allocation7_spill] sm:$0xff] }
 0x507   : > { %v3651_v21 = vsel %vm3650_vm4, %v3648_v34, %v4387_v55  ;;  %v3652_v10 = vsel %vm3650_vm4, %v3649_v44, %v4388_v2  ;;  %v4373_v43 = vunpack.i.h.bf16 %v4371_v41  ;;  %v4372_v19 = vunpack.i.l.bf16 %v4371_v41 }
 0x508   : > { %v4391_v11 = vpop.permute.xlu1 %4390  ;;  %v3654_v58 = vsel %vm3653_vm5, %v3651_v21, %v4352_v33  ;;  %v3655_v3 = vsel %vm3653_vm5, %v3652_v10, %v4353_v53  ;;  %v5851_v21 = vld [vmem:[#allocation8_spill] sm:$0xff] }
 0x509   : > { %v3673_v27 = vsel %vm3656_vm6, %v3671_v13, %v4372_v19  ;;  %v3674_v0 = vsel %vm3656_vm6, %v3672_v35, %v4373_v43  ;;  %v4393_v22 = vunpack.i.h.bf16 %v4391_v11  ;;  %v4392_v17 = vunpack.i.l.bf16 %v4391_v11 }
 0x50a   : > { %v4376_v52 = vpop.permute.xlu0 %4375  ;;  %v3675_v50 = vsel %vm3659_vm7, %v3673_v27, %v4342_v4  ;;  %v3676_v40 = vsel %vm3659_vm7, %v3674_v0, %v4343_v12 }
 0x50b   : > { %v3657_v16 = vsel %vm3656_vm6, %v3654_v58, %v4392_v17  ;;  %v3658_v36 = vsel %vm3656_vm6, %v3655_v3, %v4393_v22  ;;  %v4378_v26 = vunpack.i.h.bf16 %v4376_v52  ;;  %v4377_v24 = vunpack.i.l.bf16 %v4376_v52 }
 0x50c   : > { %v4396_v61 = vpop.permute.xlu1 %4395  ;;  %v3660_v37 = vsel %vm3659_vm7, %v3657_v16, %v4357_v60  ;;  %v3661_v56 = vsel %vm3659_vm7, %v3658_v36, %v4358_v47 }
 0x50d   : > { %v3677_v1 = vsel %vm3662_vm8, %v3675_v50, %v4377_v24  ;;  %v3678_v25 = vsel %vm3662_vm8, %v3676_v40, %v4378_v26  ;;  %v4398_v42 = vunpack.i.h.bf16 %v4396_v61  ;;  %v4397_v62 = vunpack.i.l.bf16 %v4396_v61 }
 0x50e   : > { %v4289_v23 = vpack.c.bf16 %v3678_v25, %v3677_v1 }
 0x50f   : > { %v3663_v7 = vsel %vm3662_vm8, %v3660_v37, %v4397_v62  ;;  %v3664_v28 = vsel %vm3662_vm8, %v3661_v56, %v4398_v42 }
 0x510   : > { %v4292_v54 = vpack.c.bf16 %v3664_v28, %v3663_v7  ;;  %4291 = vmatprep.subr.msk.bf16.mxu0 %vm4290_vm10, %v4289_v23 }
 0x512   : > { %4294 = vmatpush1.bf16.msk.msra.mxu0 %vm4290_vm10, %v4292_v54 }
 0x515   : > { %3939 = vmatmul.mubr.msk.f32.vlgmr.msra.gmra.mrb[18].mxu0 %vm3681_vm11, %v3679_v31 }
 0x516   : > { %3764 = vmatprep.mubr.f32.mxu0 %v5847_v32 }
 0x519   : > { %3940 = vmatmul.mubr.msk.f32.gmra.mrb[20].mxu0 %vm3681_vm11, %v3680_v45 }
 0x51b   : > { %v541_v38 = vpop.permute.xlu0 %540 }
 0x51c   : > { %v578_v9 = vmul.f32 %v541_v38, %v5848_v14  ;;  %v579_v39 = vmul.f32 %v541_v38, %v5849_v15 }
 0x51d   : > { %v546_v59 = vpop.permute.xlu1 %545 }
 0x51e   : > { %v580_v46 = vmul.f32 %v546_v59, %v5850_v57  ;;  %v581_v10 = vmul.f32 %v546_v59, %v5851_v21 }
 0x51f   : > { %v3776_v8 = vpop.permute.xlu0 %3775 }
 0x521   : > { %v3781_v30 = vpop.permute.xlu1 %3780 }
 0x523   : > { %v605_v48 = vpop.permute.xlu0 %604 }
 0x524   : > { %v642_v18 = vadd.f32 %v605_v48, %v578_v9  ;;  %v643_v6 = vadd.f32 %v605_v48, %v579_v39 }
 0x525   : > { %v610_v20 = vpop.permute.xlu1 %609 }
 0x526   : > { %v644_v33 = vadd.f32 %v610_v20, %v580_v46  ;;  %v645_v11 = vadd.f32 %v610_v20, %v581_v10 }
 0x527   : > { %v3792_v32 = vpop.permute.xlu0 %3791 }
 0x529   : > { %v3797_v43 = vpop.permute.xlu1 %3796 }
 0x5e8   : > { %v3760_v63 = vpop.f32.mrb[18].mxu0 }
 0x5e9   : > { %v3783_v49 = vmul.f32 %v3776_v8, %v3760_v63  ;;  %v3762_v51 = vpop.f32.mrb[19].mxu0 }
 0x5ea   : > { %v3784_v5 = vmul.f32 %v3776_v8, %v3762_v51 }
 0x5eb   : > { %v3799_v29 = vadd.f32 %v3792_v32, %v3783_v49 }
 0x5ec   : > { %v3800_v2 = vadd.f32 %v3792_v32, %v3784_v5  ;;  %v3766_v55 = vpop.f32.mrb[20].mxu0 }
 0x5ed   : > { %v3803_v34 = vadd.f32 %v3799_v29, %v642_v18  ;;  %v3785_v44 = vmul.f32 %v3781_v30, %v3766_v55  ;;  %v3768_v41 = vpop.f32.mrb[21].mxu0 }
 0x5ee   : > { %v3804_v19 = vadd.f32 %v3800_v2, %v643_v6  ;;  %v3786_v53 = vmul.f32 %v3781_v30, %v3768_v41 }
 0x5ef   : > { %v3807_v13 = vmax.f32 %v3803_v34, 0.0  ;;  %v3801_v35 = vadd.f32 %v3797_v43, %v3785_v44 }
 0x5f0   : > { %v3808_v27 = vmax.f32 %v3804_v19, 0.0  ;;  %v3802_v0 = vadd.f32 %v3797_v43, %v3786_v53 }
 0x5f1   : > { %3811 = vst [vmem:[%s373_s12] sm:$0xff] %v3807_v13  ;;  %v3805_v22 = vadd.f32 %v3801_v35, %v644_v33 }
 0x5f2   : > { %3812 = vst [vmem:[%s373_s12 + $0x8] sm:$0xff] %v3808_v27  ;;  %v3806_v17 = vadd.f32 %v3802_v0, %v645_v11 }
 0x5f3   : > { %v3809_v12 = vmax.f32 %v3805_v22, 0.0 }
 0x5f4   : > { %v3810_v4 = vmax.f32 %v3806_v17, 0.0 }
 0x5f5   : > { %3813 = vst [vmem:[%s373_s12 + $0x10] sm:$0xff] %v3809_v12 }
 0x5f6   : > { %3814 = vst [vmem:[%s373_s12 + $0x18] sm:$0xff] %v3810_v4 }
 0x5f7 PF: > { %s21_s13 = sadd.s32 1, %s4491_s13  }
 0x5f8   : > { %p18_p1 = scmp.ge.s32.totalorder %s21_s13, 4  }
 0x5fa   :  { %20 = sbr.rel (!%p18_p1) target bundleno = 1 (0x1), region = 95 }
 0x601   :  { %3836 = vsyncpa [#allocation3], 1 }
 0x602   :  { %3838 = vsyncpa [#allocation3 + $0x1], 1 }

</bundles_post_ra>
